<compile_context>
chip_gen: v7x
topology: tpu7x:2x2x1
jax: 0.10.0
libtpu: 0.0.40
codegen_flags: <defaults>
</compile_context>

<pallas_src>
import functools
import math

import jax
import jax.numpy as jnp
from jax import lax
from jax.experimental import pallas as pl
from jax.experimental.pallas import tpu as pltpu


def _round_up(x, m):
    return ((x + m - 1) // m) * m


def _pick_q_block(q_len, max_block=256):
    """Largest divisor of q_len that is <= max_block and a multiple of 8."""
    if q_len <= max_block:
        return q_len
    for cand in (256, 128, 64, 32, 16, 8):
        if cand <= max_block and q_len % cand == 0:
            return cand
    return q_len


# ----------------------------------------------------------------------------
# Kernel: fused projections + attention + fc_out for one (batch, q-tile) step
# ----------------------------------------------------------------------------
def _mha_kernel(q_ref, k_ref, v_ref, wq_ref, wk_ref, wv_ref, wfc_ref, bfc_ref,
                out_ref, *maybe_attn_ref, heads, head_dim, use_blockdiag):
    """q_ref: (1, tq, E_pad) bf16 tile, k_ref/v_ref: (1, K, E_pad) bf16.
    use_blockdiag=True : wq/wk/wv_ref are (E_pad, E_pad) block-diagonal,
                         pre-transposed weights (softmax scale folded into wq).
    use_blockdiag=False: wq/wk/wv_ref are per-head (D, D) pre-transposed.
    wfc_ref: (E_pad, E_pad) pre-transposed fc_out weight (bf16),
    bfc_ref: (1, E_pad) f32 bias.
    out_ref: (1, tq, E_pad) f32.  Optional attn_ref: (1, H, tq, K) f32."""
    attn_ref = maybe_attn_ref[0] if maybe_attn_ref else None
    D = head_dim
    cdt = q_ref.dtype                       # MXU operand dtype (bf16)
    tq = q_ref.shape[1]
    e_pad = out_ref.shape[-1]

    q = q_ref[0]                            # (tq, E_pad)
    k = k_ref[0]                            # (K,  E_pad)
    v = v_ref[0]                            # (K,  E_pad)

    if use_blockdiag:
        # All-head projections as single matmuls against block-diagonal weights
        # (scale already folded into wq); only worth it while D < MXU tile.
        qp = jnp.dot(q, wq_ref[...], preferred_element_type=jnp.float32)
        kp = jnp.dot(k, wk_ref[...], preferred_element_type=jnp.float32)
        vp = jnp.dot(v, wv_ref[...], preferred_element_type=jnp.float32)

    # Contract last dims of both operands: q_h @ k_h^T without an XLU transpose.
    dn_qkt = (((1,), (1,)), ((), ()))

    # fc_out accumulator -- per-head accumulation, no lane concatenation.
    y = jnp.zeros((tq, e_pad), jnp.float32)

    for h in range(heads):                  # static unroll; heads known at trace time
        sl = slice(h * D, (h + 1) * D)
        if use_blockdiag:
            qh = qp[:, sl].astype(cdt)      # (tq, D)
            kh = kp[:, sl].astype(cdt)      # (K,  D)
            vh = vp[:, sl].astype(cdt)      # (K,  D)
        else:
            qh = jnp.dot(q[:, sl], wq_ref[...],
                         preferred_element_type=jnp.float32).astype(cdt)
            kh = jnp.dot(k[:, sl], wk_ref[...],
                         preferred_element_type=jnp.float32).astype(cdt)
            vh = jnp.dot(v[:, sl], wv_ref[...],
                         preferred_element_type=jnp.float32).astype(cdt)

        energy = lax.dot_general(qh, kh, dn_qkt,
                                 preferred_element_type=jnp.float32)   # (tq, K)

        # numerically stable softmax over keys; stats kept in f32 (v5e-safe)
        m = jnp.max(energy, axis=-1, keepdims=True)
        p = jnp.exp(energy - m)
        l = jnp.sum(p, axis=-1, keepdims=True)
        attn = p * pl.reciprocal(l, approx=True)   # divide on the EUP slot

        if attn_ref is not None:
            attn_ref[0, h] = attn

        ctx_h = jnp.dot(attn.astype(cdt), vh,
                        preferred_element_type=jnp.float32)            # (tq, D)
        # fused fc_out, accumulated per head (static sublane slice of Wfc^T)
        y = y + jnp.dot(ctx_h.astype(cdt), wfc_ref[h * D:(h + 1) * D, :],
                        preferred_element_type=jnp.float32)

    out_ref[0] = y + bfc_ref[...]


# ----------------------------------------------------------------------------
# Wrapper
# ----------------------------------------------------------------------------
def multi_head_attention(values, keys, query, params, *, embed_size, heads,
                         mask=None, return_attention=True,
                         compute_dtype=jnp.bfloat16, q_block=None):
    """values, keys, query: (N, L, embed_size) float32.
    params: 'Wv','Wk','Wq' (D,D) shared across heads (matches the torch module),
            'Wfc' (E,E), 'bfc' (E,).
    Returns (out (N, Q, E), attention (N, H, Q, K)) like the torch forward."""
    if mask is not None:
        # TODO(synk): masked_fill(mask == 0, -1e20) on the energy not wired in.
        raise NotImplementedError("attention mask not implemented in the kernel")

    N, vL, E = values.shape
    kL = keys.shape[1]
    qL = query.shape[1]
    assert E == embed_size and keys.shape[2] == E and query.shape[2] == E
    assert kL == vL, "key/value sequence lengths must match"
    D = embed_size // heads
    assert D * heads == embed_size

    E_pad = _round_up(E, 128)              # lane-dense output / projection tiles
    use_blockdiag = D < 128                # only fuse heads while D < MXU tile
    scale = 1.0 / math.sqrt(float(embed_size))

    def _pad2(w):
        return jnp.pad(w, ((0, E_pad - w.shape[0]), (0, E_pad - w.shape[1])))

    if use_blockdiag:
        # Pre-transposed per-head block-diagonal weights so
        # (tq, E) @ blockdiag(W.T) == per-head x @ W.T; scale folded into Wq.
        # NOTE: valid because this module shares one (D,D) Linear across heads.
        eye_h = jnp.eye(heads, dtype=jnp.float32)
        wq_w = _pad2(jnp.kron(eye_h, params["Wq"].T * scale))   # (E_pad, E_pad)
        wk_w = _pad2(jnp.kron(eye_h, params["Wk"].T))
        wv_w = _pad2(jnp.kron(eye_h, params["Wv"].T))
    else:
        wq_w = params["Wq"].T * scale                            # (D, D)
        wk_w = params["Wk"].T
        wv_w = params["Wv"].T

    wfc_w = _pad2(params["Wfc"].T)                               # (E_pad, E_pad)
    bfc2d = jnp.pad(params["bfc"].reshape(1, E),
                    ((0, 0), (0, E_pad - E))).astype(jnp.float32)

    wq_w = wq_w.astype(compute_dtype)
    wk_w = wk_w.astype(compute_dtype)
    wv_w = wv_w.astype(compute_dtype)
    wfc_w = wfc_w.astype(compute_dtype)

    def _pad_in(x):
        return jnp.pad(x.astype(compute_dtype), ((0, 0), (0, 0), (0, E_pad - E)))

    q_in, k_in, v_in = _pad_in(query), _pad_in(keys), _pad_in(values)

    if q_block is None:
        q_block = _pick_q_block(qL)
    assert qL % q_block == 0
    n_qt = qL // q_block

    kernel = functools.partial(_mha_kernel, heads=heads, head_dim=D,
                               use_blockdiag=use_blockdiag)

    out_spec = pl.BlockSpec((1, q_block, E_pad), lambda n, t: (n, t, 0))
    if return_attention:
        out_shape = (jax.ShapeDtypeStruct((N, qL, E_pad), jnp.float32),
                     jax.ShapeDtypeStruct((N, heads, qL, kL), jnp.float32))
        out_specs = (out_spec,
                     pl.BlockSpec((1, heads, q_block, kL),
                                  lambda n, t: (n, 0, t, 0)))
    else:
        out_shape = jax.ShapeDtypeStruct((N, qL, E_pad), jnp.float32)
        out_specs = out_spec

    dims = ("parallel", "parallel")
    try:
        cap = int(pltpu.get_tpu_info().vmem_capacity_bytes)
        # 96 MiB on 128-MiB chips (v5e/v6e), ~48 MiB on v7x's 64 MiB.
        cparams = pltpu.CompilerParams(
            dimension_semantics=dims,
            vmem_limit_bytes=min(96 * 1024 * 1024, (cap * 3) // 4))
    except Exception:
        cparams = pltpu.CompilerParams(dimension_semantics=dims)

    result = pl.pallas_call(
        kernel,
        out_shape=out_shape,
        grid_spec=pltpu.PrefetchScalarGridSpec(
            num_scalar_prefetch=0,
            grid=(N, n_qt),
            in_specs=[
                pl.BlockSpec((1, q_block, E_pad), lambda n, t: (n, t, 0)),
                pl.BlockSpec((1, kL, E_pad), lambda n, t: (n, 0, 0)),
                pl.BlockSpec((1, vL, E_pad), lambda n, t: (n, 0, 0)),
                pl.BlockSpec(wq_w.shape, lambda n, t: (0, 0)),
                pl.BlockSpec(wk_w.shape, lambda n, t: (0, 0)),
                pl.BlockSpec(wv_w.shape, lambda n, t: (0, 0)),
                pl.BlockSpec((E_pad, E_pad), lambda n, t: (0, 0)),
                pl.BlockSpec((1, E_pad), lambda n, t: (0, 0)),
            ],
            out_specs=out_specs,
        ),
        compiler_params=cparams,
    )(q_in, k_in, v_in, wq_w, wk_w, wv_w, wfc_w, bfc2d)

    if return_attention:
        out_pad, attention = result
    else:
        out_pad, attention = result, None

    out = out_pad[:, :, :E] if E_pad != E else out_pad
    return (out, attention) if return_attention else out


# ----------------------------------------------------------------------------
# Pure-JAX reference (mirrors the PyTorch forward) for a correctness check
# ----------------------------------------------------------------------------
def _reference(values, keys, query, params, *, embed_size, heads):
    N, vL, E = values.shape
    kL, qL = keys.shape[1], query.shape[1]
    D = embed_size // heads
    v = values.reshape(N, vL, heads, D) @ params["Wv"].T
    k = keys.reshape(N, kL, heads, D) @ params["Wk"].T
    q = query.reshape(N, qL, heads, D) @ params["Wq"].T
    energy = jnp.einsum("nqhd,nkhd->nhqk", q, k)
    attn = jax.nn.softmax(energy / math.sqrt(embed_size), axis=3)
    out = jnp.einsum("nhql,nlhd->nqhd", attn, v).reshape(N, qL, embed_size)
    out = out @ params["Wfc"].T + params["bfc"]
    return out, attn


# ----------------------------------------------------------------------------
if __name__ == "__main__":
    embed_size, heads = 32, 4
    head_dim = embed_size // heads
    N, seq = 2, 8

    key = jax.random.PRNGKey(0)
    k_v, k_k, k_q, k_wv, k_wk, k_wq, k_wfc, k_bfc = jax.random.split(key, 8)

    values = jax.random.normal(k_v, (N, seq, embed_size), dtype=jnp.float32)
    keys_in = jax.random.normal(k_k, (N, seq, embed_size), dtype=jnp.float32)
    query = jax.random.normal(k_q, (N, seq, embed_size), dtype=jnp.float32)

    lim_hd = 1.0 / math.sqrt(head_dim)
    lim_e = 1.0 / math.sqrt(embed_size)
    params = {
        "Wv": jax.random.uniform(k_wv, (head_dim, head_dim), jnp.float32, -lim_hd, lim_hd),
        "Wk": jax.random.uniform(k_wk, (head_dim, head_dim), jnp.float32, -lim_hd, lim_hd),
        "Wq": jax.random.uniform(k_wq, (head_dim, head_dim), jnp.float32, -lim_hd, lim_hd),
        "Wfc": jax.random.uniform(k_wfc, (embed_size, embed_size), jnp.float32, -lim_e, lim_e),
        "bfc": jax.random.uniform(k_bfc, (embed_size,), jnp.float32, -lim_e, lim_e),
    }

    out, attn = multi_head_attention(
        values, keys_in, query, params, embed_size=embed_size, heads=heads)
    jax.block_until_ready((out, attn))

    out_ref, attn_ref = _reference(
        values, keys_in, query, params, embed_size=embed_size, heads=heads)
    assert out.shape == (N, seq, embed_size)
    assert attn.shape == (N, heads, seq, seq)
    # bf16 MXU operands + approx reciprocal vs. a pure-f32 reference: use a
    # bf16-appropriate tolerance (accumulation is f32, so errors remain small).
    assert jnp.allclose(out, out_ref, atol=2e-2, rtol=2e-2), \
        float(jnp.max(jnp.abs(out - out_ref)))
    assert jnp.allclose(attn, attn_ref, atol=2e-2, rtol=2e-2), \
        float(jnp.max(jnp.abs(attn - attn_ref)))

    print("KERNEL_OK")
</pallas_src>

<mosaic_0001>
module attributes {stable_mosaic.version = 11 : i64} {
  func.func @_mha_kernel(%arg0: i32, %arg1: i32, %arg2: memref<1x8x128xbf16, #tpu.memory_space<vmem>>, %arg3: memref<1x8x128xbf16, #tpu.memory_space<vmem>>, %arg4: memref<1x8x128xbf16, #tpu.memory_space<vmem>>, %arg5: memref<128x128xbf16, #tpu.memory_space<vmem>>, %arg6: memref<128x128xbf16, #tpu.memory_space<vmem>>, %arg7: memref<128x128xbf16, #tpu.memory_space<vmem>>, %arg8: memref<128x128xbf16, #tpu.memory_space<vmem>>, %arg9: memref<1x128xf32, #tpu.memory_space<vmem>>, %arg10: memref<1x8x128xf32, #tpu.memory_space<vmem>>, %arg11: memref<1x4x8x8xf32, #tpu.memory_space<vmem>>) attributes {dimension_semantics = [#tpu.dimension_semantics<parallel>, #tpu.dimension_semantics<parallel>], iteration_bounds = array<i64: 2, 1>, scalar_prefetch = 0 : i64, scratch_operands = 0 : i64, tpu.core_type = #tpu.core_type<tc>, window_params = [{transform_indices = @transform_0, window_bounds = array<i64: 1, 8, 128>}, {transform_indices = @transform_1, window_bounds = array<i64: 1, 8, 128>}, {transform_indices = @transform_2, window_bounds = array<i64: 1, 8, 128>}, {pipeline_mode = #tpu.pipeline_mode<synchronous>, transform_indices = @transform_3, window_bounds = array<i64: 128, 128>}, {pipeline_mode = #tpu.pipeline_mode<synchronous>, transform_indices = @transform_4, window_bounds = array<i64: 128, 128>}, {pipeline_mode = #tpu.pipeline_mode<synchronous>, transform_indices = @transform_5, window_bounds = array<i64: 128, 128>}, {pipeline_mode = #tpu.pipeline_mode<synchronous>, transform_indices = @transform_6, window_bounds = array<i64: 128, 128>}, {pipeline_mode = #tpu.pipeline_mode<synchronous>, transform_indices = @transform_7, window_bounds = array<i64: 1, 128>}, {transform_indices = @transform_8, window_bounds = array<i64: 1, 8, 128>}, {transform_indices = @transform_9, window_bounds = array<i64: 1, 4, 8, 8>}]} {
    %c0 = arith.constant 0 : index
    %c0_0 = arith.constant 0 : index
    %c0_1 = arith.constant 0 : index
    %0 = vector.load %arg2[%c0, %c0_0, %c0_1] : memref<1x8x128xbf16, #tpu.memory_space<vmem>>, vector<1x8x128xbf16>
    %1 = vector.shape_cast %0 : vector<1x8x128xbf16> to vector<8x128xbf16>
    %c0_2 = arith.constant 0 : index
    %c0_3 = arith.constant 0 : index
    %c0_4 = arith.constant 0 : index
    %2 = vector.load %arg3[%c0_2, %c0_3, %c0_4] : memref<1x8x128xbf16, #tpu.memory_space<vmem>>, vector<1x8x128xbf16>
    %3 = vector.shape_cast %2 : vector<1x8x128xbf16> to vector<8x128xbf16>
    %c0_5 = arith.constant 0 : index
    %c0_6 = arith.constant 0 : index
    %c0_7 = arith.constant 0 : index
    %4 = vector.load %arg4[%c0_5, %c0_6, %c0_7] : memref<1x8x128xbf16, #tpu.memory_space<vmem>>, vector<1x8x128xbf16>
    %5 = vector.shape_cast %4 : vector<1x8x128xbf16> to vector<8x128xbf16>
    %c0_8 = arith.constant 0 : index
    %c0_9 = arith.constant 0 : index
    %6 = vector.load %arg5[%c0_8, %c0_9] : memref<128x128xbf16, #tpu.memory_space<vmem>>, vector<128x128xbf16>
    %cst = arith.constant dense<0.000000e+00> : vector<8x128xf32>
    %7 = tpu.matmul %1, %6, %cst {dimension_numbers = #tpu.dot_dimension_numbers<[1], [0], [0], [1], [0, 0, 1, 1], [], []>} : vector<8x128xbf16>, vector<128x128xbf16>, vector<8x128xf32> -> vector<8x128xf32>
    %c0_10 = arith.constant 0 : index
    %c0_11 = arith.constant 0 : index
    %8 = vector.load %arg6[%c0_10, %c0_11] : memref<128x128xbf16, #tpu.memory_space<vmem>>, vector<128x128xbf16>
    %cst_12 = arith.constant dense<0.000000e+00> : vector<8x128xf32>
    %9 = tpu.matmul %3, %8, %cst_12 {dimension_numbers = #tpu.dot_dimension_numbers<[1], [0], [0], [1], [0, 0, 1, 1], [], []>} : vector<8x128xbf16>, vector<128x128xbf16>, vector<8x128xf32> -> vector<8x128xf32>
    %c0_13 = arith.constant 0 : index
    %c0_14 = arith.constant 0 : index
    %10 = vector.load %arg7[%c0_13, %c0_14] : memref<128x128xbf16, #tpu.memory_space<vmem>>, vector<128x128xbf16>
    %cst_15 = arith.constant dense<0.000000e+00> : vector<8x128xf32>
    %11 = tpu.matmul %5, %10, %cst_15 {dimension_numbers = #tpu.dot_dimension_numbers<[1], [0], [0], [1], [0, 0, 1, 1], [], []>} : vector<8x128xbf16>, vector<128x128xbf16>, vector<8x128xf32> -> vector<8x128xf32>
    %cst_16 = arith.constant 0.000000e+00 : f32
    %12 = vector.broadcast %cst_16 : f32 to vector<8x128xf32>
    %13 = vector.extract_strided_slice %7 {offsets = [0, 0], sizes = [8, 8], strides = [1, 1]} : vector<8x128xf32> to vector<8x8xf32>
    %14 = arith.truncf %13 : vector<8x8xf32> to vector<8x8xbf16>
    %15 = vector.extract_strided_slice %9 {offsets = [0, 0], sizes = [8, 8], strides = [1, 1]} : vector<8x128xf32> to vector<8x8xf32>
    %16 = arith.truncf %15 : vector<8x8xf32> to vector<8x8xbf16>
    %17 = vector.extract_strided_slice %11 {offsets = [0, 0], sizes = [8, 8], strides = [1, 1]} : vector<8x128xf32> to vector<8x8xf32>
    %18 = arith.truncf %17 : vector<8x8xf32> to vector<8x8xbf16>
    %cst_17 = arith.constant dense<0.000000e+00> : vector<8x8xf32>
    %19 = tpu.matmul %14, %16, %cst_17 {dimension_numbers = #tpu.dot_dimension_numbers<[1], [1], [0], [0], [0, 0, 1, 0], [], []>} : vector<8x8xbf16>, vector<8x8xbf16>, vector<8x8xf32> -> vector<8x8xf32>
    %cst_18 = arith.constant dense<0xFF800000> : vector<8xf32>
    %20 = vector.multi_reduction <maximumf>, %19, %cst_18 [1] : vector<8x8xf32> to vector<8xf32>
    %21 = vector.shape_cast %20 : vector<8xf32> to vector<8x1xf32>
    %22 = vector.broadcast %21 : vector<8x1xf32> to vector<8x8xf32>
    %23 = arith.subf %19, %22 : vector<8x8xf32>
    %24 = math.exp %23 : vector<8x8xf32>
    %cst_19 = arith.constant dense<0.000000e+00> : vector<8xf32>
    %25 = vector.multi_reduction <add>, %24, %cst_19 [1] : vector<8x8xf32> to vector<8xf32>
    %26 = vector.shape_cast %25 : vector<8xf32> to vector<8x1xf32>
    %27 = tpu.reciprocal %26 {approx = true} : vector<8x1xf32> -> vector<8x1xf32>
    %28 = vector.broadcast %27 : vector<8x1xf32> to vector<8x8xf32>
    %29 = arith.mulf %24, %28 : vector<8x8xf32>
    %c0_20 = arith.constant 0 : index
    %c0_21 = arith.constant 0 : index
    %c0_22 = arith.constant 0 : index
    %c0_23 = arith.constant 0 : index
    %30 = vector.load %arg11[%c0_20, %c0_21, %c0_22, %c0_23] : memref<1x4x8x8xf32, #tpu.memory_space<vmem>>, vector<1x1x8x8xf32>
    %31 = vector.shape_cast %30 : vector<1x1x8x8xf32> to vector<8x8xf32>
    %32 = vector.shape_cast %29 : vector<8x8xf32> to vector<1x1x8x8xf32>
    tpu.vector_store %arg11[%c0_20, %c0_21, %c0_22, %c0_23], %32 {strides = array<i32>} : memref<1x4x8x8xf32, #tpu.memory_space<vmem>>, vector<1x1x8x8xf32>,
    %33 = arith.truncf %29 : vector<8x8xf32> to vector<8x8xbf16>
    %cst_24 = arith.constant dense<0.000000e+00> : vector<8x8xf32>
    %34 = tpu.matmul %33, %18, %cst_24 {dimension_numbers = #tpu.dot_dimension_numbers<[1], [0], [0], [1], [0, 0, 1, 1], [], []>} : vector<8x8xbf16>, vector<8x8xbf16>, vector<8x8xf32> -> vector<8x8xf32>
    %35 = arith.truncf %34 : vector<8x8xf32> to vector<8x8xbf16>
    %c0_25 = arith.constant 0 : index
    %c0_26 = arith.constant 0 : index
    %36 = vector.load %arg8[%c0_25, %c0_26] : memref<128x128xbf16, #tpu.memory_space<vmem>>, vector<8x128xbf16>
    %cst_27 = arith.constant dense<0.000000e+00> : vector<8x128xf32>
    %37 = tpu.matmul %35, %36, %cst_27 {dimension_numbers = #tpu.dot_dimension_numbers<[1], [0], [0], [1], [0, 0, 1, 1], [], []>} : vector<8x8xbf16>, vector<8x128xbf16>, vector<8x128xf32> -> vector<8x128xf32>
    %38 = arith.addf %12, %37 : vector<8x128xf32>
    %39 = vector.extract_strided_slice %7 {offsets = [0, 8], sizes = [8, 8], strides = [1, 1]} : vector<8x128xf32> to vector<8x8xf32>
    %40 = arith.truncf %39 : vector<8x8xf32> to vector<8x8xbf16>
    %41 = vector.extract_strided_slice %9 {offsets = [0, 8], sizes = [8, 8], strides = [1, 1]} : vector<8x128xf32> to vector<8x8xf32>
    %42 = arith.truncf %41 : vector<8x8xf32> to vector<8x8xbf16>
    %43 = vector.extract_strided_slice %11 {offsets = [0, 8], sizes = [8, 8], strides = [1, 1]} : vector<8x128xf32> to vector<8x8xf32>
    %44 = arith.truncf %43 : vector<8x8xf32> to vector<8x8xbf16>
    %cst_28 = arith.constant dense<0.000000e+00> : vector<8x8xf32>
    %45 = tpu.matmul %40, %42, %cst_28 {dimension_numbers = #tpu.dot_dimension_numbers<[1], [1], [0], [0], [0, 0, 1, 0], [], []>} : vector<8x8xbf16>, vector<8x8xbf16>, vector<8x8xf32> -> vector<8x8xf32>
    %cst_29 = arith.constant dense<0xFF800000> : vector<8xf32>
    %46 = vector.multi_reduction <maximumf>, %45, %cst_29 [1] : vector<8x8xf32> to vector<8xf32>
    %47 = vector.shape_cast %46 : vector<8xf32> to vector<8x1xf32>
    %48 = vector.broadcast %47 : vector<8x1xf32> to vector<8x8xf32>
    %49 = arith.subf %45, %48 : vector<8x8xf32>
    %50 = math.exp %49 : vector<8x8xf32>
    %cst_30 = arith.constant dense<0.000000e+00> : vector<8xf32>
    %51 = vector.multi_reduction <add>, %50, %cst_30 [1] : vector<8x8xf32> to vector<8xf32>
    %52 = vector.shape_cast %51 : vector<8xf32> to vector<8x1xf32>
    %53 = tpu.reciprocal %52 {approx = true} : vector<8x1xf32> -> vector<8x1xf32>
    %54 = vector.broadcast %53 : vector<8x1xf32> to vector<8x8xf32>
    %55 = arith.mulf %50, %54 : vector<8x8xf32>
    %c0_31 = arith.constant 0 : index
    %c1 = arith.constant 1 : index
    %c0_32 = arith.constant 0 : index
    %c0_33 = arith.constant 0 : index
    %56 = vector.load %arg11[%c0_31, %c1, %c0_32, %c0_33] : memref<1x4x8x8xf32, #tpu.memory_space<vmem>>, vector<1x1x8x8xf32>
    %57 = vector.shape_cast %56 : vector<1x1x8x8xf32> to vector<8x8xf32>
    %58 = vector.shape_cast %55 : vector<8x8xf32> to vector<1x1x8x8xf32>
    tpu.vector_store %arg11[%c0_31, %c1, %c0_32, %c0_33], %58 {strides = array<i32>} : memref<1x4x8x8xf32, #tpu.memory_space<vmem>>, vector<1x1x8x8xf32>,
    %59 = arith.truncf %55 : vector<8x8xf32> to vector<8x8xbf16>
    %cst_34 = arith.constant dense<0.000000e+00> : vector<8x8xf32>
    %60 = tpu.matmul %59, %44, %cst_34 {dimension_numbers = #tpu.dot_dimension_numbers<[1], [0], [0], [1], [0, 0, 1, 1], [], []>} : vector<8x8xbf16>, vector<8x8xbf16>, vector<8x8xf32> -> vector<8x8xf32>
    %61 = arith.truncf %60 : vector<8x8xf32> to vector<8x8xbf16>
    %c8 = arith.constant 8 : index
    %c0_35 = arith.constant 0 : index
    %62 = vector.load %arg8[%c8, %c0_35] : memref<128x128xbf16, #tpu.memory_space<vmem>>, vector<8x128xbf16>
    %cst_36 = arith.constant dense<0.000000e+00> : vector<8x128xf32>
    %63 = tpu.matmul %61, %62, %cst_36 {dimension_numbers = #tpu.dot_dimension_numbers<[1], [0], [0], [1], [0, 0, 1, 1], [], []>} : vector<8x8xbf16>, vector<8x128xbf16>, vector<8x128xf32> -> vector<8x128xf32>
    %64 = arith.addf %38, %63 : vector<8x128xf32>
    %65 = vector.extract_strided_slice %7 {offsets = [0, 16], sizes = [8, 8], strides = [1, 1]} : vector<8x128xf32> to vector<8x8xf32>
    %66 = arith.truncf %65 : vector<8x8xf32> to vector<8x8xbf16>
    %67 = vector.extract_strided_slice %9 {offsets = [0, 16], sizes = [8, 8], strides = [1, 1]} : vector<8x128xf32> to vector<8x8xf32>
    %68 = arith.truncf %67 : vector<8x8xf32> to vector<8x8xbf16>
    %69 = vector.extract_strided_slice %11 {offsets = [0, 16], sizes = [8, 8], strides = [1, 1]} : vector<8x128xf32> to vector<8x8xf32>
    %70 = arith.truncf %69 : vector<8x8xf32> to vector<8x8xbf16>
    %cst_37 = arith.constant dense<0.000000e+00> : vector<8x8xf32>
    %71 = tpu.matmul %66, %68, %cst_37 {dimension_numbers = #tpu.dot_dimension_numbers<[1], [1], [0], [0], [0, 0, 1, 0], [], []>} : vector<8x8xbf16>, vector<8x8xbf16>, vector<8x8xf32> -> vector<8x8xf32>
    %cst_38 = arith.constant dense<0xFF800000> : vector<8xf32>
    %72 = vector.multi_reduction <maximumf>, %71, %cst_38 [1] : vector<8x8xf32> to vector<8xf32>
    %73 = vector.shape_cast %72 : vector<8xf32> to vector<8x1xf32>
    %74 = vector.broadcast %73 : vector<8x1xf32> to vector<8x8xf32>
    %75 = arith.subf %71, %74 : vector<8x8xf32>
    %76 = math.exp %75 : vector<8x8xf32>
    %cst_39 = arith.constant dense<0.000000e+00> : vector<8xf32>
    %77 = vector.multi_reduction <add>, %76, %cst_39 [1] : vector<8x8xf32> to vector<8xf32>
    %78 = vector.shape_cast %77 : vector<8xf32> to vector<8x1xf32>
    %79 = tpu.reciprocal %78 {approx = true} : vector<8x1xf32> -> vector<8x1xf32>
    %80 = vector.broadcast %79 : vector<8x1xf32> to vector<8x8xf32>
    %81 = arith.mulf %76, %80 : vector<8x8xf32>
    %c0_40 = arith.constant 0 : index
    %c2 = arith.constant 2 : index
    %c0_41 = arith.constant 0 : index
    %c0_42 = arith.constant 0 : index
    %82 = vector.load %arg11[%c0_40, %c2, %c0_41, %c0_42] : memref<1x4x8x8xf32, #tpu.memory_space<vmem>>, vector<1x1x8x8xf32>
    %83 = vector.shape_cast %82 : vector<1x1x8x8xf32> to vector<8x8xf32>
    %84 = vector.shape_cast %81 : vector<8x8xf32> to vector<1x1x8x8xf32>
    tpu.vector_store %arg11[%c0_40, %c2, %c0_41, %c0_42], %84 {strides = array<i32>} : memref<1x4x8x8xf32, #tpu.memory_space<vmem>>, vector<1x1x8x8xf32>,
    %85 = arith.truncf %81 : vector<8x8xf32> to vector<8x8xbf16>
    %cst_43 = arith.constant dense<0.000000e+00> : vector<8x8xf32>
    %86 = tpu.matmul %85, %70, %cst_43 {dimension_numbers = #tpu.dot_dimension_numbers<[1], [0], [0], [1], [0, 0, 1, 1], [], []>} : vector<8x8xbf16>, vector<8x8xbf16>, vector<8x8xf32> -> vector<8x8xf32>
    %87 = arith.truncf %86 : vector<8x8xf32> to vector<8x8xbf16>
    %c16 = arith.constant 16 : index
    %c0_44 = arith.constant 0 : index
    %88 = vector.load %arg8[%c16, %c0_44] : memref<128x128xbf16, #tpu.memory_space<vmem>>, vector<8x128xbf16>
    %cst_45 = arith.constant dense<0.000000e+00> : vector<8x128xf32>
    %89 = tpu.matmul %87, %88, %cst_45 {dimension_numbers = #tpu.dot_dimension_numbers<[1], [0], [0], [1], [0, 0, 1, 1], [], []>} : vector<8x8xbf16>, vector<8x128xbf16>, vector<8x128xf32> -> vector<8x128xf32>
    %90 = arith.addf %64, %89 : vector<8x128xf32>
    %91 = vector.extract_strided_slice %7 {offsets = [0, 24], sizes = [8, 8], strides = [1, 1]} : vector<8x128xf32> to vector<8x8xf32>
    %92 = arith.truncf %91 : vector<8x8xf32> to vector<8x8xbf16>
    %93 = vector.extract_strided_slice %9 {offsets = [0, 24], sizes = [8, 8], strides = [1, 1]} : vector<8x128xf32> to vector<8x8xf32>
    %94 = arith.truncf %93 : vector<8x8xf32> to vector<8x8xbf16>
    %95 = vector.extract_strided_slice %11 {offsets = [0, 24], sizes = [8, 8], strides = [1, 1]} : vector<8x128xf32> to vector<8x8xf32>
    %96 = arith.truncf %95 : vector<8x8xf32> to vector<8x8xbf16>
    %cst_46 = arith.constant dense<0.000000e+00> : vector<8x8xf32>
    %97 = tpu.matmul %92, %94, %cst_46 {dimension_numbers = #tpu.dot_dimension_numbers<[1], [1], [0], [0], [0, 0, 1, 0], [], []>} : vector<8x8xbf16>, vector<8x8xbf16>, vector<8x8xf32> -> vector<8x8xf32>
    %cst_47 = arith.constant dense<0xFF800000> : vector<8xf32>
    %98 = vector.multi_reduction <maximumf>, %97, %cst_47 [1] : vector<8x8xf32> to vector<8xf32>
    %99 = vector.shape_cast %98 : vector<8xf32> to vector<8x1xf32>
    %100 = vector.broadcast %99 : vector<8x1xf32> to vector<8x8xf32>
    %101 = arith.subf %97, %100 : vector<8x8xf32>
    %102 = math.exp %101 : vector<8x8xf32>
    %cst_48 = arith.constant dense<0.000000e+00> : vector<8xf32>
    %103 = vector.multi_reduction <add>, %102, %cst_48 [1] : vector<8x8xf32> to vector<8xf32>
    %104 = vector.shape_cast %103 : vector<8xf32> to vector<8x1xf32>
    %105 = tpu.reciprocal %104 {approx = true} : vector<8x1xf32> -> vector<8x1xf32>
    %106 = vector.broadcast %105 : vector<8x1xf32> to vector<8x8xf32>
    %107 = arith.mulf %102, %106 : vector<8x8xf32>
    %c0_49 = arith.constant 0 : index
    %c3 = arith.constant 3 : index
    %c0_50 = arith.constant 0 : index
    %c0_51 = arith.constant 0 : index
    %108 = vector.load %arg11[%c0_49, %c3, %c0_50, %c0_51] : memref<1x4x8x8xf32, #tpu.memory_space<vmem>>, vector<1x1x8x8xf32>
    %109 = vector.shape_cast %108 : vector<1x1x8x8xf32> to vector<8x8xf32>
    %110 = vector.shape_cast %107 : vector<8x8xf32> to vector<1x1x8x8xf32>
    tpu.vector_store %arg11[%c0_49, %c3, %c0_50, %c0_51], %110 {strides = array<i32>} : memref<1x4x8x8xf32, #tpu.memory_space<vmem>>, vector<1x1x8x8xf32>,
    %111 = arith.truncf %107 : vector<8x8xf32> to vector<8x8xbf16>
    %cst_52 = arith.constant dense<0.000000e+00> : vector<8x8xf32>
    %112 = tpu.matmul %111, %96, %cst_52 {dimension_numbers = #tpu.dot_dimension_numbers<[1], [0], [0], [1], [0, 0, 1, 1], [], []>} : vector<8x8xbf16>, vector<8x8xbf16>, vector<8x8xf32> -> vector<8x8xf32>
    %113 = arith.truncf %112 : vector<8x8xf32> to vector<8x8xbf16>
    %c24 = arith.constant 24 : index
    %c0_53 = arith.constant 0 : index
    %114 = vector.load %arg8[%c24, %c0_53] : memref<128x128xbf16, #tpu.memory_space<vmem>>, vector<8x128xbf16>
    %cst_54 = arith.constant dense<0.000000e+00> : vector<8x128xf32>
    %115 = tpu.matmul %113, %114, %cst_54 {dimension_numbers = #tpu.dot_dimension_numbers<[1], [0], [0], [1], [0, 0, 1, 1], [], []>} : vector<8x8xbf16>, vector<8x128xbf16>, vector<8x128xf32> -> vector<8x128xf32>
    %116 = arith.addf %90, %115 : vector<8x128xf32>
    %c0_55 = arith.constant 0 : index
    %c0_56 = arith.constant 0 : index
    %117 = vector.load %arg9[%c0_55, %c0_56] : memref<1x128xf32, #tpu.memory_space<vmem>>, vector<1x128xf32>
    %118 = vector.broadcast %117 : vector<1x128xf32> to vector<8x128xf32>
    %119 = arith.addf %116, %118 : vector<8x128xf32>
    %c0_57 = arith.constant 0 : index
    %c0_58 = arith.constant 0 : index
    %c0_59 = arith.constant 0 : index
    %120 = vector.load %arg10[%c0_57, %c0_58, %c0_59] : memref<1x8x128xf32, #tpu.memory_space<vmem>>, vector<1x8x128xf32>
    %121 = vector.shape_cast %120 : vector<1x8x128xf32> to vector<8x128xf32>
    %122 = vector.shape_cast %119 : vector<8x128xf32> to vector<1x8x128xf32>
    tpu.vector_store %arg10[%c0_57, %c0_58, %c0_59], %122 {strides = array<i32>} : memref<1x8x128xf32, #tpu.memory_space<vmem>>, vector<1x8x128xf32>,
    return
  }
  func.func @transform_0(%arg0: i32, %arg1: i32) -> (i32, i32, i32) {
    %c0_i32 = arith.constant 0 : i32
    %c0_i32_0 = arith.constant 0 : i32
    return %arg0, %arg1, %c0_i32 : i32, i32, i32
  }
  func.func @transform_1(%arg0: i32, %arg1: i32) -> (i32, i32, i32) {
    %c0_i32 = arith.constant 0 : i32
    %c0_i32_0 = arith.constant 0 : i32
    %c0_i32_1 = arith.constant 0 : i32
    return %arg0, %c0_i32, %c0_i32_0 : i32, i32, i32
  }
  func.func @transform_2(%arg0: i32, %arg1: i32) -> (i32, i32, i32) {
    %c0_i32 = arith.constant 0 : i32
    %c0_i32_0 = arith.constant 0 : i32
    %c0_i32_1 = arith.constant 0 : i32
    return %arg0, %c0_i32, %c0_i32_0 : i32, i32, i32
  }
  func.func @transform_3(%arg0: i32, %arg1: i32) -> (i32, i32) {
    %c0_i32 = arith.constant 0 : i32
    %c0_i32_0 = arith.constant 0 : i32
    %c0_i32_1 = arith.constant 0 : i32
    return %c0_i32, %c0_i32_0 : i32, i32
  }
  func.func @transform_4(%arg0: i32, %arg1: i32) -> (i32, i32) {
    %c0_i32 = arith.constant 0 : i32
    %c0_i32_0 = arith.constant 0 : i32
    %c0_i32_1 = arith.constant 0 : i32
    return %c0_i32, %c0_i32_0 : i32, i32
  }
  func.func @transform_5(%arg0: i32, %arg1: i32) -> (i32, i32) {
    %c0_i32 = arith.constant 0 : i32
    %c0_i32_0 = arith.constant 0 : i32
    %c0_i32_1 = arith.constant 0 : i32
    return %c0_i32, %c0_i32_0 : i32, i32
  }
  func.func @transform_6(%arg0: i32, %arg1: i32) -> (i32, i32) {
    %c0_i32 = arith.constant 0 : i32
    %c0_i32_0 = arith.constant 0 : i32
    %c0_i32_1 = arith.constant 0 : i32
    return %c0_i32, %c0_i32_0 : i32, i32
  }
  func.func @transform_7(%arg0: i32, %arg1: i32) -> (i32, i32) {
    %c0_i32 = arith.constant 0 : i32
    %c0_i32_0 = arith.constant 0 : i32
    %c0_i32_1 = arith.constant 0 : i32
    return %c0_i32, %c0_i32_0 : i32, i32
  }
  func.func @transform_8(%arg0: i32, %arg1: i32) -> (i32, i32, i32) {
    %c0_i32 = arith.constant 0 : i32
    %c0_i32_0 = arith.constant 0 : i32
    return %arg0, %arg1, %c0_i32 : i32, i32, i32
  }
  func.func @transform_9(%arg0: i32, %arg1: i32) -> (i32, i32, i32, i32) {
    %c0_i32 = arith.constant 0 : i32
    %c0_i32_0 = arith.constant 0 : i32
    %c0_i32_1 = arith.constant 0 : i32
    return %arg0, %c0_i32, %arg1, %c0_i32_0 : i32, i32, i32, i32
  }
}

</mosaic_0001>

<bundles_post_ra>
// kernel: tpu_custom_call.1
= control target key start
LH: loop header
LB: loop body
LE: loop exit
PB: predicated region body
PF: predicated region fallthrough
CT: control target
= control target key end

     0   :  { %s3087_s0 = inlined_call_operand.hbm [shape: bf16[2,8,128], index: 0, kind: input, shape index: {}]   ;;  %s3088_s1 = inlined_call_operand.hbm [shape: bf16[2,8,128], index: 1, kind: input, shape index: {}]   ;;  %s3089_s2 = inlined_call_operand.hbm [shape: bf16[2,8,128], index: 2, kind: input, shape index: {}]   ;;  %s3090_s3 = inlined_call_operand.hbm [shape: bf16[128,128], index: 3, kind: input, shape index: {}]   ;;  %s3091_s4 = inlined_call_operand.hbm [shape: bf16[128,128], index: 4, kind: input, shape index: {}]   ;;  %s3092_s5 = inlined_call_operand.hbm [shape: bf16[128,128], index: 5, kind: input, shape index: {}]   ;;  %s3093_s6 = inlined_call_operand.hbm [shape: bf16[128,128], index: 6, kind: input, shape index: {}]   ;;  %s3094_s7 = inlined_call_operand.vmem [shape: f32[1,128], index: 7, kind: input, shape index: {}]   ;;  %s3095_s8 = inlined_call_operand.hbm [shape: f32[2,8,128], index: 8, kind: output, shape index: {0}]   ;;  %s3096_s9 = inlined_call_operand.hbm [shape: f32[2,4,8,8], index: 9, kind: output, shape index: {1}]  }
   0x1   :  { %3122 = sst [smem:[#allocation29_spill]] %s3088_s1 }
   0x2   :  { %3123 = sst [smem:[#allocation30_spill]] %s3090_s3 }
   0x3   :  { %3124 = sst [smem:[#allocation31_spill]] %s3092_s5 }
   0x4   :  { %3125 = sst [smem:[#allocation32_spill]] %s3094_s7 }
   0x5   :  { %3126 = sst [smem:[#allocation33_spill]] %s3095_s8 }
   0x6   :  { %3127 = sst [smem:[#allocation34_spill]] %s3096_s9 }
   0x7   :  { %15 = vsyncpa [#allocation3], 0 }
   0x8   :  { %17 = vsyncpa [#allocation3 + $0x1], 0 }
   0x9   :  { %18 = vsyncpa [#allocation6], 0 }
   0xa   :  { %20 = vsyncpa [#allocation6 + $0x1], 0 }
   0xb   :  { %21 = vsyncpa [#allocation9], 0 }
   0xc   :  { %22 = vsyncpa [#allocation12], 0 }
   0xd   :  { %23 = vsyncpa [#allocation4], 0 }
   0xe   :  { %25 = vsyncpa [#allocation4 + $0x1], 0 }
   0xf   :  { %26 = vsyncpa [#allocation16], 0 }
  0x10   :  { %28 = vsyncpa [#allocation16 + $0x1], 0  ;;  %s2527_s30 = smov 0   ;;  %s2529_s10 = smov 0  }
  0x11   :  { %s2531_s11 = smov 0   ;;  %s2533_s12 = smov 0  }
  0x12   :  { %s2535_s13 = smov 0   ;;  %s2537_s14 = smov 0  }
  0x13 LB: > { %3128 = sst [smem:[#allocation23_spill]] %s2437_s30  ;;  %s2558_s15 = sadd.s32 4294967295, %s2457_s14   ;;  %s2457_s14 = sphi %s2537_s14, %s34_s14   ;;  %s2453_s13 = sphi %s2535_s13, %s3172_s13   ;;  %s2449_s12 = sphi %s2533_s12, %s3171_s12   ;;  %s2445_s11 = sphi %s2531_s11, %s3175_s11   ;;  %s2441_s10 = sphi %s2529_s10, %s3174_s10   ;;  %s2437_s30 = sphi %s2527_s30, %s3173_s30  }
  0x14   : > { %3129 = sst [smem:[#allocation24_spill]] %s2453_s13  ;;  %p1709_p0 = scmp.ge.s32.totalorder %s2457_s14, 1 }
  0x15   : > { %3130 = sst [smem:[#allocation25_spill]] %s2457_s14  ;;  %p3107_p1 = scmp.eq.s32.totalorder %s2558_s15, 0 }
  0x16   : > { %p292_p2 = scmp.lt.s32.totalorder %s2457_s14, 3  ;;  %s2459_s17 = smov [#allocation8]  }
  0x17   : > { %s304_s18 = sshll.u32 %s2459_s17, 4  ;;  %s2460_s20 = smov [#allocation11]   ;;  %s2567_s18 = int_to_ptr.vmem [resolvable:$true] %s304_s18 }
  0x18   : > { %p2563_p3 = pnand %p1709_p0, %p292_p2  ;;  %s330_s21 = sshll.u32 %s2460_s20, 4  ;;  %s2578_s21 = int_to_ptr.vmem [resolvable:$true] %s330_s21 }
  0x19   : > { %s3133_s3 = sld [smem:[#allocation30_spill]] }
  0x1a   : > { %s3131_s16 = scalar_select %p2563_p3, 1, 0 }
  0x1b   : > { %p1988_p4 = pneg %p2563_p3 }
  0x1d   : > { %p2574_p6 = pnand %p1988_p4, %p3107_p1 }
  0x1f   : > { %s3132_s19 = scalar_select %p2574_p6, 1, 0 }
  0x20   : > { %s2129_s24 = scalar_lea.hbm %s3133_s3, 1024  ;;  %p2588_p8 = pneg %p2574_p6 }
  0x21   : > { %p2130_p7 = scmp.ne.s32.totalorder %s3133_s3, %s2129_s24  ;;  %p2136_p11 = scmp.lt.u32.totalorder %s2129_s24, %s3133_s3 }
  0x22   : > { %s3134_s27 = scalar_select %p2588_p8, 1, 0 }
  0x23   : > { %p2132_p9 = pnand %p2588_p8, %p2130_p7 }
  0x25   : > { %p2133_p10 = pneg %p2132_p9 }
  0x27   : > { %p2138_p12 = pnand %p2136_p11, %p2133_p10 }
  0x29   : > { %2141 = shalt.err (!%p2138_p12)
}
  0x2a   : > { %s2142_s17 = scalar_lea.vmem %s2567_s18, 1024  ;;  %p2150_p4 = scmp.lt.s32.totalorder %s2567_s18, %s2567_s18 }
  0x2b   : > { %p2143_p13 = scmp.ne.s32.totalorder %s2567_s18, %s2142_s17  ;;  %p2151_p5 = scmp.lt.s32.totalorder %s2142_s17, %s2142_s17 }
  0x2d   : > { %p2145_p0 = pnand %p2143_p13, %p2588_p8  ;;  %p2152_p7 = por %p2151_p5, %p2150_p4 }
  0x2f   : > { %p2146_p2 = pneg %p2145_p0 }
  0x31   : > { %p2153_p9 = pnand %p2152_p7, %p2146_p2 }
  0x33   : > { %2156 = shalt.err (!%p2153_p9)
}
  0x34   : > { %s3098_s20 = smov 64   ;;  %s3100_s22 = smov 4  }
  0x35   : > { %1991 = dma.hbm_to_vmem [thread:$0]  (!%p2574_p6), %s3133_s3, 1024, %s2567_s18, [#allocation9], %s3098_s20, %s3098_s20, %s3100_s22  }
  0x36   : > { %s3135_s5 = sld [smem:[#allocation31_spill]] }
  0x3c   : > { %s2157_s28 = scalar_lea.hbm %s3135_s5, 1024 }
  0x3d   : > { %p2158_p5 = scmp.ne.s32.totalorder %s3135_s5, %s2157_s28  ;;  %p2164_p12 = scmp.lt.u32.totalorder %s2157_s28, %s3135_s5 }
  0x3f   : > { %p2160_p10 = pnand %p2158_p5, %p2588_p8 }
  0x41   : > { %p2161_p11 = pneg %p2160_p10 }
  0x43   : > { %p2166_p13 = pnand %p2164_p12, %p2161_p11 }
  0x45   : > { %2169 = shalt.err (!%p2166_p13)
}
  0x46   : > { %s2170_s18 = scalar_lea.vmem %s2578_s21, 1024  ;;  %p2178_p7 = scmp.lt.s32.totalorder %s2578_s21, %s2578_s21 }
  0x47   : > { %p2171_p0 = scmp.ne.s32.totalorder %s2578_s21, %s2170_s18  ;;  %p2179_p9 = scmp.lt.s32.totalorder %s2170_s18, %s2170_s18 }
  0x49   : > { %p2173_p2 = pnand %p2171_p0, %p2588_p8  ;;  %p2180_p5 = por %p2179_p9, %p2178_p7 }
  0x4b   : > { %p2174_p4 = pneg %p2173_p2 }
  0x4d   : > { %p2181_p10 = pnand %p2180_p5, %p2174_p4 }
  0x4f   : > { %2184 = shalt.err (!%p2181_p10)
}
  0x50   : > { %1997 = dma.hbm_to_vmem [thread:$0]  (!%p2574_p6), %s3135_s5, 1024, %s2578_s21, [#allocation12], %s3098_s20, %s3098_s20, %s3100_s22  }
  0x51   : > { %s1708_s23 = sadd.s32 4294967294, %s2457_s14   ;;  %s46_s24 = sadd.s32 1, %s2453_s13 }
  0x52   : > { %p48_p11 = scmp.ge.s32.totalorder %s46_s24, 2  ;;  %s55_s25 = sadd.s32 1, %s2445_s11 }
  0x53   : > { %p62_p12 = scmp.ne.s32.totalorder %s2445_s11, %s2441_s10  ;;  %p63_p13 = scmp.eq.s32.totalorder %s2457_s14, 0 }
  0x54   : > { %s3177_s24 = smov (%p48_p11, %s46_s24), 0  ;;  %p68_p2 = scmp.ne.s32.totalorder %s2441_s10, %s2437_s30 }
  0x55   : > { %3136 = sst [smem:[#allocation26_spill]] %s3177_s24  ;;  %p2646_p0 = por %p63_p13, %p62_p12 }
  0x56   : > { %s50_s21 = ssub.s32 %s2453_s13, %s3177_s24  ;;  %p251_p4 = scmp.eq.s32.totalorder %s2558_s15, 1 }
  0x57   : > { %p53_p7 = scmp.eq.s32.totalorder %s50_s21, 0  ;;  %p2657_p9 = por %p3107_p1, %p68_p2 }
  0x58   : > { %p2661_p5 = por %p251_p4, %p62_p12  ;;  %p257_p10 = scmp.eq.s32.totalorder %s1708_s23, 1 }
  0x59   : > { %s3138_s28 = scalar_select %p2657_p9, 1, 0 }
  0x5a   : > { %s3139_s29 = scalar_select %p2661_p5, 1, 0 }
  0x5b   : > { %s2666_s17 = scalar_select %p53_p7, %s2445_s11, %s55_s25  }
  0x5c   : > { %p2668_p11 = por %p257_p10, %p68_p2  ;;  %p2022_p13 = scmp.lt.s32.totalorder %s2457_s14, 2 }
  0x5d   : > { %3140 = sst [smem:[#allocation27_spill]] %s2666_s17  ;;  %s3102_s7 = sand.u32 1, %s2445_s11  }
  0x5e   : > { %s3141_s18 = scalar_select %p2668_p11, 1, 0 }
  0x5f   : > { %s2675_s8 = sshll.u32 %s2453_s13, 6  ;;  %s2679_s21 = sshll.u32 %s3102_s7, 2 }
  0x60   : > { %3142 = sst [smem:[#allocation28_spill]] %s3141_s18  ;;  %p2683_p12 = pnand %p2022_p13, %p2646_p0 }
  0x61   : > { %s379_s23 = sand.u32 1, %s2457_s14   ;;  %s3144_s1 = sld [smem:[#allocation29_spill]] }
  0x62   : > { %s3143_s20 = scalar_select %p2683_p12, 1, 0 }
  0x63   : > { %s383_s5 = scalar_lea.vmem [#allocation5], %s2679_s21  ;;  %s2697_s26 = scalar_lea.sflag [#allocation6], %s379_s23 }
  0x64   : > { %s390_s7 = sshll.u32 %s383_s5, 4  ;;  %p2703_p2 = pneg %p2683_p12  ;;  %s2695_s7 = int_to_ptr.vmem [resolvable:$true] %s390_s7 }
  0x66   : > { %s3145_s13 = scalar_select %p2703_p2, 1, 0 }
  0x67   : > { %s2692_s3 = scalar_lea.hbm %s3144_s1, %s2675_s8  ;;  %s2190_s17 = scalar_lea.hbm %s3144_s1, 128 }
  0x68   : > { %s2185_s24 = scalar_lea.hbm %s2692_s3, 64  ;;  %p2191_p10 = scmp.lt.u32.totalorder %s2692_s3, %s3144_s1 }
  0x69   : > { %p2186_p0 = scmp.ne.s32.totalorder %s2692_s3, %s2185_s24  ;;  %p2192_p13 = scmp.lt.u32.totalorder %s2190_s17, %s2185_s24 }
  0x6a   : > { %p2194_p11 = scmp.lt.u32.totalorder %s2185_s24, %s2692_s3 }
  0x6b   : > { %p2188_p4 = pnand %p2703_p2, %p2186_p0  ;;  %p2193_p1 = por %p2192_p13, %p2191_p10 }
  0x6d   : > { %p2189_p7 = pneg %p2188_p4  ;;  %p2195_p5 = por %p2194_p11, %p2193_p1 }
  0x6f   : > { %p2196_p9 = pnand %p2195_p5, %p2189_p7 }
  0x71   : > { %2199 = shalt.err (!%p2196_p9)
}
  0x72   : > { %s2200_s23 = scalar_lea.vmem %s2695_s7, 64  ;;  %s2463_s22 = smov [#allocation5]  }
  0x73   : > { %p2201_p0 = scmp.ne.s32.totalorder %s2695_s7, %s2200_s23  ;;  %s2205_s25 = sshll.u32 %s2463_s22, 4  ;;  %s2206_s25 = int_to_ptr.vmem [resolvable:$false] %s2205_s25 }
  0x74   : > { %s2207_s14 = scalar_lea.vmem %s2206_s25, 128  ;;  %p2208_p6 = scmp.lt.s32.totalorder %s2695_s7, %s2206_s25 }
  0x75   : > { %p2203_p4 = pnand %p2201_p0, %p2703_p2  ;;  %p2209_p8 = scmp.lt.s32.totalorder %s2207_s14, %s2200_s23 }
  0x77   : > { %p2204_p3 = pneg %p2203_p4  ;;  %p2210_p10 = por %p2209_p8, %p2208_p6 }
  0x79   : > { %p2211_p13 = pnand %p2210_p10, %p2204_p3 }
  0x7b   : > { %2214 = shalt.err (!%p2211_p13)
}
  0x7c   : > { %2007 = dma.hbm_to_vmem [thread:$0]  (!%p2683_p12), %s2692_s3, 64, %s2695_s7, %s2697_s26  }
  0x7d   : > { %s2464_s24 = smov [#allocation10]   ;;  %s2465_s5 = smov [#allocation13]  }
  0x7e   : > { %s317_s17 = sshll.u32 %s2464_s24, 4  ;;  %s343_s1 = sshll.u32 %s2465_s5, 4  ;;  %s318_s17 = int_to_ptr.vmem [resolvable:$true] %s317_s17  ;;  %s344_s1 = int_to_ptr.vmem [resolvable:$true] %s343_s1 }
  0x7f   : > { %s2215_s25 = scalar_lea.hbm %s3091_s4, 1024  ;;  %p3146_p3 = scmp.ne.s32.totalorder %s3134_s27, 0 }
  0x80   : > { %p2216_p1 = scmp.ne.s32.totalorder %s3091_s4, %s2215_s25  ;;  %p2222_p9 = scmp.lt.u32.totalorder %s2215_s25, %s3091_s4 }
  0x82   : > { %p2218_p6 = pnand %p2216_p1, %p3146_p3 }
  0x84   : > { %p2219_p8 = pneg %p2218_p6 }
  0x86   : > { %p2224_p5 = pnand %p2222_p9, %p2219_p8 }
  0x88   : > { %2227 = shalt.err (!%p2224_p5)
}
  0x89   : > { %s2228_s3 = scalar_lea.vmem %s318_s17, 1024  ;;  %p2236_p4 = scmp.lt.s32.totalorder %s318_s17, %s318_s17 }
  0x8a   : > { %p2229_p11 = scmp.ne.s32.totalorder %s318_s17, %s2228_s3  ;;  %p2237_p10 = scmp.lt.s32.totalorder %s2228_s3, %s2228_s3 }
  0x8c   : > { %p2231_p7 = pnand %p2229_p11, %p3146_p3  ;;  %p2238_p13 = por %p2237_p10, %p2236_p4 }
  0x8e   : > { %p2232_p0 = pneg %p2231_p7 }
  0x90   : > { %p2239_p12 = pnand %p2238_p13, %p2232_p0 }
  0x92   : > { %2242 = shalt.err (!%p2239_p12)
}
  0x93   : > { %p3147_p1 = scmp.ne.s32.totalorder %s3132_s19, 0  ;;  %s3148_s18 = smov 4  }
  0x94   : > { %s3149_s7 = smov 64   ;;  %s2243_s22 = scalar_lea.hbm %s3093_s6, 1024 }
  0x95   : > { %1994 = dma.hbm_to_vmem [thread:$0]  (!%p3147_p1), %s3091_s4, 1024, %s318_s17, [#allocation9], %s3149_s7, %s3149_s7, %s3148_s18  }
  0x96   : > { %p2244_p6 = scmp.ne.s32.totalorder %s3093_s6, %s2243_s22  ;;  %p2250_p9 = scmp.lt.u32.totalorder %s2243_s22, %s3093_s6 }
  0x98   : > { %p2246_p12 = pnand %p2244_p6, %p3146_p3 }
  0x9a   : > { %p2247_p8 = pneg %p2246_p12 }
  0x9c   : > { %p2252_p5 = pnand %p2250_p9, %p2247_p8 }
  0x9e   : > { %2255 = shalt.err (!%p2252_p5)
}
  0x9f   : > { %s2256_s9 = scalar_lea.vmem %s344_s1, 1024  ;;  %p2264_p4 = scmp.lt.s32.totalorder %s344_s1, %s344_s1 }
  0xa0   : > { %p2257_p11 = scmp.ne.s32.totalorder %s344_s1, %s2256_s9  ;;  %p2265_p10 = scmp.lt.s32.totalorder %s2256_s9, %s2256_s9 }
  0xa2   : > { %p2259_p7 = pnand %p2257_p11, %p3146_p3  ;;  %p2266_p13 = por %p2265_p10, %p2264_p4 }
  0xa4   : > { %p2260_p0 = pneg %p2259_p7 }
  0xa6   : > { %p2267_p2 = pnand %p2266_p13, %p2260_p0 }
  0xa8   : > { %2270 = shalt.err (!%p2267_p2)
}
  0xa9   : > { %2000 = dma.hbm_to_vmem [thread:$0]  (!%p3147_p1), %s3093_s6, 1024, %s344_s1, [#allocation12], %s3149_s7, %s3149_s7, %s3148_s18  }
  0xaa   : > { %s2773_s5 = scalar_lea.hbm %s3087_s0, %s2675_s8  ;;  %s364_s19 = scalar_lea.vmem [#allocation2], %s2679_s21 }
  0xab   : > { %s372_s22 = sshll.u32 %s364_s19, 4  ;;  %s2782_s14 = scalar_lea.hbm %s3089_s2, %s2675_s8  ;;  %s2776_s22 = int_to_ptr.vmem [resolvable:$true] %s372_s22 }
  0xac   : > { %s3150_s3 = sand.u32 1, %s2445_s11   ;;  %s2271_s18 = scalar_lea.hbm %s2773_s5, 64 }
  0xad   : > { %s361_s1 = scalar_lea.sflag [#allocation3], %s3150_s3  ;;  %p2272_p2 = scmp.ne.s32.totalorder %s2773_s5, %s2271_s18 }
  0xae   : > { %p3151_p3 = scmp.ne.s32.totalorder %s3145_s13, 0  ;;  %s2276_s17 = scalar_lea.hbm %s3087_s0, 128 }
  0xaf   : > { %p2277_p12 = scmp.lt.u32.totalorder %s2773_s5, %s3087_s0  ;;  %p2278_p8 = scmp.lt.u32.totalorder %s2276_s17, %s2271_s18 }
  0xb0   : > { %p2274_p1 = pnand %p2272_p2, %p3151_p3  ;;  %p2280_p5 = scmp.lt.u32.totalorder %s2271_s18, %s2773_s5 }
  0xb1   : > { %p2279_p9 = por %p2278_p8, %p2277_p12 }
  0xb2   : > { %p2275_p6 = pneg %p2274_p1 }
  0xb3   : > { %p2281_p11 = por %p2280_p5, %p2279_p9 }
  0xb5   : > { %p2282_p7 = pnand %p2281_p11, %p2275_p6 }
  0xb7   : > { %2285 = shalt.err (!%p2282_p7)
}
  0xb8   : > { %s2286_s8 = scalar_lea.vmem %s2776_s22, 64  ;;  %s2466_s24 = smov [#allocation2]  }
  0xb9   : > { %p2287_p0 = scmp.ne.s32.totalorder %s2776_s22, %s2286_s8  ;;  %s2291_s19 = sshll.u32 %s2466_s24, 4  ;;  %s2292_s19 = int_to_ptr.vmem [resolvable:$false] %s2291_s19 }
  0xba   : > { %s2293_s25 = scalar_lea.vmem %s2292_s19, 128  ;;  %p2294_p13 = scmp.lt.s32.totalorder %s2776_s22, %s2292_s19 }
  0xbb   : > { %p2289_p4 = pnand %p2287_p0, %p3151_p3  ;;  %p2295_p2 = scmp.lt.s32.totalorder %s2293_s25, %s2286_s8 }
  0xbd   : > { %p2290_p10 = pneg %p2289_p4  ;;  %p2296_p1 = por %p2295_p2, %p2294_p13 }
  0xbf   : > { %p2297_p12 = pnand %p2296_p1, %p2290_p10 }
  0xc1   : > { %2300 = shalt.err (!%p2297_p12)
}
  0xc2   : > { %p3152_p6 = scmp.ne.s32.totalorder %s3143_s20, 0  ;;  %s401_s23 = scalar_lea.vmem [#allocation7], %s2679_s21 }
  0xc3   : > { %s408_s3 = sshll.u32 %s401_s23, 4  ;;  %s2301_s18 = scalar_lea.hbm %s2782_s14, 64  ;;  %s409_s3 = int_to_ptr.vmem [resolvable:$true] %s408_s3 }
  0xc4   : > { %2004 = dma.hbm_to_vmem [thread:$0]  (!%p3152_p6), %s2773_s5, 64, %s2776_s22, %s361_s1  }
  0xc5   : > { %p2302_p8 = scmp.ne.s32.totalorder %s2782_s14, %s2301_s18  ;;  %s2306_s17 = scalar_lea.hbm %s3089_s2, 128 }
  0xc6   : > { %p2307_p11 = scmp.lt.u32.totalorder %s2782_s14, %s3089_s2  ;;  %p2308_p7 = scmp.lt.u32.totalorder %s2306_s17, %s2301_s18 }
  0xc7   : > { %p2304_p9 = pnand %p2302_p8, %p3151_p3  ;;  %p2310_p4 = scmp.lt.u32.totalorder %s2301_s18, %s2782_s14 }
  0xc8   : > { %p2309_p0 = por %p2308_p7, %p2307_p11 }
  0xc9   : > { %p2305_p5 = pneg %p2304_p9 }
  0xca   : > { %p2311_p10 = por %p2310_p4, %p2309_p0 }
  0xcc   : > { %p2312_p13 = pnand %p2311_p10, %p2305_p5 }
  0xce   : > { %2315 = shalt.err (!%p2312_p13)
}
  0xcf   : > { %s2316_s21 = scalar_lea.vmem %s409_s3, 64  ;;  %s2467_s5 = smov [#allocation7]  }
  0xd0   : > { %p2317_p2 = scmp.ne.s32.totalorder %s409_s3, %s2316_s21  ;;  %s2321_s22 = sshll.u32 %s2467_s5, 4  ;;  %s2322_s22 = int_to_ptr.vmem [resolvable:$false] %s2321_s22 }
  0xd1   : > { %s2323_s1 = scalar_lea.vmem %s2322_s22, 128  ;;  %p2324_p8 = scmp.lt.s32.totalorder %s409_s3, %s2322_s22 }
  0xd2   : > { %p2319_p1 = pnand %p2317_p2, %p3151_p3  ;;  %p2325_p9 = scmp.lt.s32.totalorder %s2323_s1, %s2316_s21 }
  0xd4   : > { %p2320_p12 = pneg %p2319_p1  ;;  %p2326_p6 = por %p2325_p9, %p2324_p8 }
  0xd6   : > { %p2327_p7 = pnand %p2326_p6, %p2320_p12 }
  0xd8   : > { %2330 = shalt.err (!%p2327_p7)
}
  0xd9   : > { %p3153_p11 = scmp.ne.s32.totalorder %s3143_s20, 0  ;;  %p3154_p5 = scmp.ne.s32.totalorder %s3131_s16, 0 }
  0xda   : > { %s2829_s13 = sand.u32 (!%p3154_p5), 1, %s2441_s10   ;;  %p3155_p3 = scmp.ne.s32.totalorder (!%p3154_p5), %s3138_s28, 0 }
  0xdb   : > { %2010 = dma.hbm_to_vmem [thread:$0]  (!%p3153_p11), %s2782_s14, 64, %s409_s3, %s2697_s26  }
  0xdc   : > { %417 = sbr.rel (%p3154_p5) target bundleno = 3288 (0xcd8), region = 52  ;;  %s2832_s8 = sshll.u32 (!%p3154_p5), %s2829_s13, 2 }
  0xdd   : > { %s420_s24 = scalar_lea.sflag (!%p3154_p5), [#allocation3], %s2829_s13  ;;  %s423_s19 = scalar_lea.vmem (!%p3154_p5), [#allocation2], %s2832_s8 }
  0xe3   : > { %2412 = dma.done.wait (%p3155_p3), %s420_s24, 64  }
  0xe4   : > { %2414 = vsyncadd (%p3155_p3), %s420_s24, 4294967232  ;;  %s428_s16 = sand.u32 1, %s2558_s15   ;;  %s432_s26 = scalar_lea.vmem [#allocation5], %s2832_s8 }
  0xe5   : > { %s429_s20 = scalar_lea.sflag [#allocation6], %s428_s16 }
  0xe6   : > { %2416 = dma.done.wait (%p3155_p3), %s429_s20, 128  }
  0xe7   : > { %2418 = vsyncadd (%p3155_p3), %s429_s20, 4294967168  ;;  %s441_s14 = scalar_lea.vmem [#allocation7], %s2832_s8  ;;  %p3156_p6 = scmp.eq.s32.totalorder %s2558_s15, 0 }
  0xe9   : > { %2420 = dma.done.wait (%p3156_p6), [#allocation9], 2048   ;;  %p3157_p0 = pmov %p3156_p6 }
  0xeb   : > { %2422 = vsyncadd (%p3157_p0), [#allocation9], 4294965248  ;;  %p3158_p4 = pmov %p3157_p0 }
  0xec   : > { %p3159_p10 = pmov %p3157_p0 }
  0xed   : > { %2424 = dma.done.wait (%p3158_p4), [#allocation12], 2048  }
  0xee   : > { %2426 = vsyncadd (%p3159_p10), [#allocation12], 4294965248  ;;  %v2468_v0 = vmov 0.0   ;;  %vm2469_vm0 = vmmov 0   ;;  %v2089_v1 = vld [vmem:[#allocation10] sm:$0xff]   ;;  %v2090_v2 = vld [vmem:[#allocation10 + $0x8] sm:$0xff]  }
  0xef   : > { %1850 = vmatprep.subr.bf16.mxu1 %v2468_v0  ;;  %1830 = vmatprep.subr.bf16.mxu0 %v2468_v0  ;;  %v2091_v3 = vld [vmem:[#allocation8] sm:$0xff]   ;;  %v2093_v4 = vld [vmem:[#allocation8 + $0x8] sm:$0xff]   ;;  %v2092_v5 = vld [vmem:[#allocation10 + $0x10] sm:$0xff]   ;;  %vm826_vm1 = vcmask 64512   ;;  %s2470_s15 = smov 120   ;;  %vm889_vm2 = vcmask 1043456  }
  0xf0   : > { %1866 = vmatprep.mubr.msk.bf16.mxu1 %vm2469_vm0, %v2468_v0  ;;  %1846 = vmatprep.mubr.msk.bf16.mxu0 %vm2469_vm0, %v2468_v0  ;;  %v2095_v6 = vld [vmem:[#allocation8 + $0x10] sm:$0xff]   ;;  %v2094_v7 = vld [vmem:[#allocation10 + $0x18] sm:$0xff]   ;;  %v2096_v9 = vld [vmem:[#allocation10 + $0x20] sm:$0xff]   ;;  %s1730_s28 = sshll.u32 %s2829_s13, 5  ;;  %s2471_s23 = smov 112  }
  0xf1   : > { %1851 = vmatpush3.bf16.msra.mxu1 %v2089_v1  ;;  %1831 = vmatpush3.bf16.msra.mxu0 %v2091_v3  ;;  %v2097_v8 = vld [vmem:[#allocation8 + $0x18] sm:$0xff]   ;;  %v2098_v10 = vld [vmem:[#allocation10 + $0x28] sm:$0xff]   ;;  %v2099_v11 = vld [vmem:[#allocation8 + $0x20] sm:$0xff]   ;;  %s2920_s25 = scalar_lea.vmem [#allocation15], %s1730_s28  ;;  %s2472_s3 = smov 104  }
  0xf2   : > { %1852 = vmatprep.subr.bf16.mxu1 %v2468_v0  ;;  %1832 = vmatprep.subr.bf16.mxu0 %v2468_v0  ;;  %v2101_v12 = vld [vmem:[#allocation8 + $0x28] sm:$0xff]   ;;  %v2100_v13 = vld [vmem:[#allocation10 + $0x30] sm:$0xff]   ;;  %v2102_v15 = vld [vmem:[#allocation10 + $0x38] sm:$0xff]   ;;  %s1778_s18 = sshll.u32 %s2449_s12, 9  ;;  %s1509_s7 = sshll.u32 %s2920_s25, 4  ;;  %s3004_s7 = int_to_ptr.vmem [resolvable:$true] %s1509_s7 }
  0xf3   : > { %v2103_v14 = vld [vmem:[#allocation8 + $0x30] sm:$0xff]   ;;  %v2104_v16 = vld [vmem:[#allocation8 + $0x38] sm:$0xff]   ;;  %v508_v18 = vld [vmem:[%s423_s19] sm:$0xf]  ;;  %s3160_s30 = sld [smem:[#allocation34_spill]]  ;;  %s1481_s5 = scalar_lea.sflag [#allocation16], %s2829_s13 }
  0xf4   : > { %v509_v17 = vld [vmem:[%s432_s26] sm:$0xf]  ;;  %v2105_v30 = vld [vmem:[#allocation11] sm:$0xff]   ;;  %v2106_v31 = vld [vmem:[#allocation11 + $0x8] sm:$0xff]   ;;  %s2331_s22 = scalar_lea.vmem %s3004_s7, 512  ;;  %p3162_p2 = scmp.ne.s32.totalorder %s3139_s29, 0 }
  0xf5   : > { %1853 = vmatpush3.bf16.msra.mxu1 %v2090_v2  ;;  %1833 = vmatpush3.bf16.msra.mxu0 %v2093_v4  ;;  %v2107_v32 = vld [vmem:[#allocation11 + $0x10] sm:$0xff]   ;;  %v2108_v33 = vld [vmem:[#allocation11 + $0x18] sm:$0xff]   ;;  %v2109_v34 = vld [vmem:[#allocation11 + $0x20] sm:$0xff]   ;;  %p2332_p13 = scmp.ne.s32.totalorder %s3004_s7, %s2331_s22  ;;  %s2473_s1 = smov [#allocation15]  }
  0xf6   : > { %1854 = vmatprep.subr.bf16.mxu1 %v2468_v0  ;;  %1834 = vmatprep.subr.bf16.mxu0 %v2468_v0  ;;  %v2110_v35 = vld [vmem:[#allocation11 + $0x28] sm:$0xff]   ;;  %v2111_v36 = vld [vmem:[#allocation11 + $0x30] sm:$0xff]   ;;  %v2112_v37 = vld [vmem:[#allocation11 + $0x38] sm:$0xff]   ;;  %s2335_s8 = sshll.u32 %s2473_s1, 4  ;;  %s2336_s8 = int_to_ptr.vmem [resolvable:$false] %s2335_s8 }
  0xf7   : > { %v510_v38 = vld [vmem:[%s441_s14] sm:$0xf]  ;;  %p2333_p1 = pnand %p2332_p13, %p3162_p2  ;;  %s2337_s24 = scalar_lea.vmem %s2336_s8, 1024 }
  0xf8   : > { %p2338_p8 = scmp.lt.s32.totalorder %s3004_s7, %s2336_s8  ;;  %p2339_p9 = scmp.lt.s32.totalorder %s2337_s24, %s2331_s22 }
  0xf9   : > { %1855 = vmatpush3.bf16.msra.mxu1 %v2092_v5  ;;  %1835 = vmatpush3.bf16.msra.mxu0 %v2095_v6  ;;  %s3161_s27 = smov %s3160_s30  ;;  %s3002_s21 = scalar_lea.hbm %s3160_s30, %s1778_s18 }
  0xfa   : > { %1856 = vmatprep.subr.bf16.mxu1 %v2468_v0  ;;  %1836 = vmatprep.subr.bf16.mxu0 %v2468_v0  ;;  %p2334_p12 = pneg %p2333_p1  ;;  %p2340_p7 = por %p2339_p9, %p2338_p8 }
  0xfc   : > { %p2341_p11 = pnand %p2340_p7, %p2334_p12 }
  0xfd   : > { %1857 = vmatpush3.bf16.msra.mxu1 %v2094_v7  ;;  %1837 = vmatpush3.bf16.msra.mxu0 %v2097_v8 }
  0xfe   : > { %1858 = vmatprep.subr.bf16.mxu1 %v2468_v0  ;;  %1838 = vmatprep.subr.bf16.mxu0 %v2468_v0 }
 0x101   : > { %1859 = vmatpush3.bf16.msra.mxu1 %v2096_v9  ;;  %1839 = vmatpush3.bf16.msra.mxu0 %v2099_v11 }
 0x102   : > { %1860 = vmatprep.subr.bf16.mxu1 %v2468_v0  ;;  %1840 = vmatprep.subr.bf16.mxu0 %v2468_v0 }
 0x105   : > { %1861 = vmatpush3.bf16.msra.mxu1 %v2098_v10  ;;  %1841 = vmatpush3.bf16.msra.mxu0 %v2101_v12 }
 0x106   : > { %1862 = vmatprep.subr.bf16.mxu1 %v2468_v0  ;;  %1842 = vmatprep.subr.bf16.mxu0 %v2468_v0 }
 0x109   : > { %1863 = vmatpush3.bf16.msra.mxu1 %v2100_v13  ;;  %1843 = vmatpush3.bf16.msra.mxu0 %v2103_v14 }
 0x10a   : > { %1864 = vmatprep.subr.bf16.mxu1 %v2468_v0  ;;  %1844 = vmatprep.subr.bf16.mxu0 %v2468_v0 }
 0x10d   : > { %1865 = vmatpush3.bf16.msra.mxu1 %v2102_v15  ;;  %1845 = vmatpush3.bf16.msra.mxu0 %v2104_v16  ;;  %v1051_v15 = vld [vmem:[#allocation13 + $0x4] sm:$0xf] }
 0x10e   : > { %1890 = vmatprep.subr.bf16.mxu1 %v2468_v0  ;;  %1870 = vmatprep.subr.bf16.mxu0 %v2468_v0  ;;  %v1056_v16 = vsel %vm889_vm2, %v1051_v15, 0 }
 0x110   : > { %1867 = vmatmul.mubr.bf16.vlgmr.msra.gmra.mrb[0].mxu1 %v509_v17  ;;  %1847 = vmatmul.mubr.bf16.vlgmr.msra.gmra.mrb[0].mxu0 %v508_v18 }
 0x111   : > { %1892 = vmatprep.mubr.msk.bf16.mxu1 %vm2469_vm0, %v2468_v0  ;;  %1886 = vmatprep.mubr.msk.bf16.mxu0 %vm2469_vm0, %v2468_v0 }
 0x112   : > { %1871 = vmatpush3.bf16.msra.mxu0 %v2105_v30 }
 0x113   : > { %1872 = vmatprep.subr.bf16.mxu0 %v2468_v0 }
 0x116   : > { %1873 = vmatpush3.bf16.msra.mxu0 %v2106_v31 }
 0x117   : > { %1874 = vmatprep.subr.bf16.mxu0 %v2468_v0 }
 0x11a   : > { %1875 = vmatpush3.bf16.msra.mxu0 %v2107_v32 }
 0x11b   : > { %1876 = vmatprep.subr.bf16.mxu0 %v2468_v0 }
 0x11e   : > { %1877 = vmatpush3.bf16.msra.mxu0 %v2108_v33 }
 0x11f   : > { %1878 = vmatprep.subr.bf16.mxu0 %v2468_v0 }
 0x122   : > { %1879 = vmatpush3.bf16.msra.mxu0 %v2109_v34 }
 0x123   : > { %1880 = vmatprep.subr.bf16.mxu0 %v2468_v0 }
 0x126   : > { %1881 = vmatpush3.bf16.msra.mxu0 %v2110_v35 }
 0x127   : > { %1882 = vmatprep.subr.bf16.mxu0 %v2468_v0 }
 0x12a   : > { %1883 = vmatpush3.bf16.msra.mxu0 %v2111_v36 }
 0x12b   : > { %1884 = vmatprep.subr.bf16.mxu0 %v2468_v0 }
 0x12e   : > { %1885 = vmatpush3.bf16.msra.mxu0 %v2112_v37 }
 0x12f   : > { %1914 = vmatprep.subr.bf16.mxu0 %v2468_v0 }
 0x131   : > { %1887 = vmatmul.mubr.bf16.vlgmr.msra.gmra.mrb[4].mxu0 %v510_v38 }
 0x132   : > { %1916 = vmatprep.mubr.msk.bf16.mxu0 %vm2469_vm0, %v2468_v0  ;;  %1915 = vmatpush3.bf16.msra.mxu0 %v1056_v16  ;;  %v1418_v16 = vld [vmem:[#allocation13 + $0xc] sm:$0xf] }
 0x133   : > { %1926 = vmatprep.subr.bf16.mxu0 %v2468_v0 }
 0x1e3   : > { %v713_v19 = vpop.f32.mrb[0].mxu1  ;;  %v609_v23 = vpop.f32.mrb[0].mxu0 }
 0x1e4   : > { %v2885_v20 = vpack.c.bf16 %v713_v19, %v713_v19  ;;  %v1868_v21 = vpop.f32.mrb[1].mxu1  ;;  %v2891_v26 = vpack.c.bf16 %v609_v23, %v609_v23  ;;  %v1848_v27 = vpop.f32.mrb[1].mxu0  ;;  %v934_v19 = vld [vmem:[#allocation13] sm:$0xf] }
 0x1e5   : > { %v716_v22 = vpop.f32.mrb[2].mxu1  ;;  %v612_v28 = vpop.f32.mrb[2].mxu0  ;;  %v1102_v23 = vsel %vm889_vm2, %v934_v19, 0 }
 0x1e6   : > { %939 = vrot.lane.b32.xlu1 %v2885_v20, %s2470_s15  ;;  %v1869_v24 = vpop.f32.mrb[3].mxu1  ;;  %v831_v25 = vsel %vm826_vm1, %v2885_v20, 0  ;;  %v1849_v29 = vpop.f32.mrb[3].mxu0 }
 0x1e7   : > { %1891 = vmatpush3.bf16.xpose.msra.mxu1 %v831_v25 }
 0x1e8   : > { %1896 = vmatprep.subr.bf16.mxu1 %v2468_v0 }
 0x1ea   : > { %936 = vrot.lane.b32.xlu1 %v2891_v26, %s2470_s15 }
 0x1ee   : > { %1893 = vmatmul.mubr.msk.bf16.vlgmr.msra.gmra.mrb[4].mxu1 %vm826_vm1, %v2891_v26 }
 0x1ef   : > { %1898 = vmatprep.mubr.msk.bf16.mxu1 %vm2469_vm0, %v2468_v0 }
 0x204   : > { %v817_v49 = vpop.f32.mrb[4].mxu0 }
 0x205   : > { %v1888_v50 = vpop.f32.mrb[5].mxu0  ;;  %v2914_v52 = vpack.c.bf16 %v817_v49, %v817_v49 }
 0x206   : > { %v820_v51 = vpop.f32.mrb[6].mxu0 }
 0x207   : > { %v1889_v53 = vpop.f32.mrb[7].mxu0  ;;  %v891_v54 = vsel %vm889_vm2, %v2914_v52, 0 }
 0x208   : > { %1897 = vmatpush3.bf16.msra.mxu1 %v891_v54 }
 0x209   : > { %1902 = vmatprep.subr.bf16.mxu1 %v2468_v0 }
 0x258   : > { %v940_v58 = vpop.permute.xlu1 %939 }
 0x259   : > { %v945_v60 = vsel %vm826_vm1, %v940_v58, 0 }
 0x25c   : > { %v937_v61 = vpop.permute.xlu1 %936 }
 0x2c1   : > { %v867_v39 = vpop.f32.mrb[4].mxu1 }
 0x2c2   : > { %v1894_v40 = vpop.f32.mrb[5].mxu1  ;;  %v873_v41 = vsel %vm826_vm1, %v867_v39, -inf }
 0x2c3   : > { %874 = vmax.xlane.f32.xlu0 %v873_v41  ;;  %v870_v42 = vpop.f32.mrb[6].mxu1 }
 0x2c4   : > { %v1895_v43 = vpop.f32.mrb[7].mxu1 }
 0x350   : > { %v875_v44 = vpop.xlane.xlu0 %874 }
 0x351   : > { %v876_v45 = vsub.f32 %v867_v39, %v875_v44 }
 0x353   : > { %v877_v46 = vmul.f32 1.442695, %v876_v45 }
 0x355   : > { %2113 = vpow2.f32 %v877_v46 }
 0x35f   : > { %v2114_v47 = vpop.eup %2113 }
 0x360   : > { %v879_v48 = vsel %vm826_vm1, %v2114_v47, 0.0 }
 0x361   : > { %880 = vadd.xlane.f32.xlu0 %v879_v48 }
 0x3ee   : > { %v881_v55 = vpop.xlane.xlu0 %880 }
 0x3ef   : > { %2115 = vrcp.f32 %v881_v55 }
 0x3f9   : > { %v2116_v56 = vpop.eup %2115 }
 0x3fa   : > { %v883_v57 = vmul.f32 %v2116_v56, %v2114_v47 }
 0x3fc   : > { %884 = vst.msk [vmem:[%s2920_s25] sm:$0xff] %vm826_vm1, %v883_v57  ;;  %v885_v59 = vpack.c.bf16 %v883_v57, %v883_v57 }
 0x3fe   : > { %1899 = vmatmul.mubr.msk.bf16.vlgmr.msra.gmra.mrb[8].mxu1 %vm826_vm1, %v885_v59 }
 0x3ff   : > { %1903 = vmatpush3.bf16.xpose.msra.mxu1 %v945_v60  ;;  %1904 = vmatprep.mubr.msk.bf16.mxu1 %vm2469_vm0, %v2468_v0 }
 0x400   : > { %1908 = vmatprep.subr.bf16.mxu1 %v2468_v0 }
 0x406   : > { %1905 = vmatmul.mubr.msk.bf16.vlgmr.msra.gmra.mrb[12].mxu1 %vm826_vm1, %v937_v61 }
 0x407   : > { %1910 = vmatprep.mubr.msk.bf16.mxu1 %vm2469_vm0, %v2468_v0 }
 0x4d1   : > { %v927_v62 = vpop.f32.mrb[8].mxu1 }
 0x4d2   : > { %v1900_v63 = vpop.f32.mrb[9].mxu1  ;;  %v933_v25 = vpack.c.bf16 %v927_v62, %v927_v62 }
 0x4d3   : > { %v930_v1 = vpop.f32.mrb[10].mxu1 }
 0x4d4   : > { %v1901_v2 = vpop.f32.mrb[11].mxu1 }
 0x4d9   : > { %v981_v3 = vpop.f32.mrb[12].mxu1 }
 0x4da   : > { %v1906_v4 = vpop.f32.mrb[13].mxu1  ;;  %v987_v5 = vsel %vm826_vm1, %v981_v3, -inf }
 0x4db   : > { %988 = vmax.xlane.f32.xlu0 %v987_v5  ;;  %v984_v6 = vpop.f32.mrb[14].mxu1 }
 0x4dc   : > { %v1907_v7 = vpop.f32.mrb[15].mxu1 }
 0x4f1   : > { %1002 = vrot.lane.b32.xlu0 %v2914_v52, %s2470_s15 }
 0x4f5   : > { %1146 = vrot.lane.b32.xlu0 %v2885_v20, %s2471_s23 }
 0x4f9   : > { %1144 = vrot.lane.b32.xlu0 %v2891_v26, %s2471_s23 }
 0x568   : > { %v989_v8 = vpop.xlane.xlu0 %988 }
 0x569   : > { %v990_v9 = vsub.f32 %v981_v3, %v989_v8 }
 0x56b   : > { %v991_v10 = vmul.f32 1.442695, %v990_v9 }
 0x56c   : > { %v1003_v11 = vpop.permute.xlu0 %1002 }
 0x56d   : > { %2117 = vpow2.f32 %v991_v10  ;;  %v1008_v12 = vsel %vm889_vm2, %v1003_v11, 0 }
 0x56e   : > { %1909 = vmatpush3.bf16.msra.mxu1 %v1008_v12 }
 0x56f   : > { %1920 = vmatprep.subr.bf16.mxu1 %v2468_v0 }
 0x570   : > { %v1147_v28 = vpop.permute.xlu0 %1146 }
 0x571   : > { %v1152_v33 = vsel %vm826_vm1, %v1147_v28, 0 }
 0x574   : > { %v1145_v37 = vpop.permute.xlu0 %1144 }
 0x577   : > { %v2118_v13 = vpop.eup %2117 }
 0x578   : > { %v993_v14 = vsel %vm826_vm1, %v2118_v13, 0.0 }
 0x579   : > { %994 = vadd.xlane.f32.xlu1 %v993_v14 }
 0x58a   : > { %1208 = vrot.lane.b32.xlu1 %v2914_v52, %s2471_s23 }
 0x606   : > { %v995_v17 = vpop.xlane.xlu1 %994 }
 0x607   : > { %2119 = vrcp.f32 %v995_v17  ;;  %v1423_v17 = vsel %vm889_vm2, %v1418_v16, 0 }
 0x60a   : > { %v1209_v24 = vpop.permute.xlu1 %1208 }
 0x60b   : > { %v1214_v27 = vsel %vm889_vm2, %v1209_v24, 0 }
 0x611   : > { %v2120_v18 = vpop.eup %2119 }
 0x612   : > { %v997_v21 = vmul.f32 %v2120_v18, %v2118_v13 }
 0x614   : > { %1758 = vst.msk [vmem:[%s2920_s25 + $0x8] sm:$0xff] %vm826_vm1, %v997_v21  ;;  %v1000_v22 = vpack.c.bf16 %v997_v21, %v997_v21 }
 0x616   : > { %1911 = vmatmul.mubr.msk.bf16.vlgmr.msra.gmra.mrb[16].mxu1 %vm826_vm1, %v1000_v22 }
 0x617   : > { %1921 = vmatpush3.bf16.msra.mxu1 %v1102_v23  ;;  %1922 = vmatprep.mubr.msk.bf16.mxu1 %vm2469_vm0, %v2468_v0 }
 0x618   : > { %1932 = vmatprep.subr.bf16.mxu1 %v2468_v0 }
 0x61e   : > { %1923 = vmatmul.mubr.msk.bf16.vlgmr.msra.gmra.mrb[20].mxu1 %vm826_vm1, %v933_v25 }
 0x61f   : > { %1933 = vmatpush3.bf16.msra.mxu1 %v1214_v27  ;;  %1934 = vmatprep.mubr.msk.bf16.mxu1 %vm2469_vm0, %v2468_v0 }
 0x620   : > { %1944 = vmatprep.subr.bf16.mxu1 %v2468_v0 }
 0x6e9   : > { %v1044_v29 = vpop.f32.mrb[16].mxu1 }
 0x6ea   : > { %v1050_v30 = vpack.c.bf16 %v1044_v29, %v1044_v29  ;;  %v1912_v31 = vpop.f32.mrb[17].mxu1 }
 0x6eb   : > { %v1047_v32 = vpop.f32.mrb[18].mxu1 }
 0x6ec   : > { %v1913_v34 = vpop.f32.mrb[19].mxu1  ;;  %1917 = vmatmul.mubr.msk.bf16.vlgmr.msra.gmra.mrb[8].mxu0 %vm826_vm1, %v1050_v30 }
 0x6ed   : > { %1927 = vmatpush3.bf16.xpose.msra.mxu0 %v1152_v33  ;;  %1928 = vmatprep.mubr.msk.bf16.mxu0 %vm2469_vm0, %v2468_v0 }
 0x6ee   : > { %1938 = vmatprep.subr.bf16.mxu0 %v2468_v0 }
 0x6f1   : > { %v1138_v35 = vpop.f32.mrb[20].mxu1 }
 0x6f2   : > { %v1924_v36 = vpop.f32.mrb[21].mxu1 }
 0x6f3   : > { %v1141_v38 = vpop.f32.mrb[22].mxu1 }
 0x6f4   : > { %v1925_v39 = vpop.f32.mrb[23].mxu1  ;;  %1929 = vmatmul.mubr.msk.bf16.vlgmr.msra.gmra.mrb[12].mxu0 %vm826_vm1, %v1145_v37 }
 0x6f5   : > { %1940 = vmatprep.mubr.msk.bf16.mxu0 %vm2469_vm0, %v2468_v0 }
 0x7bf   : > { %v1092_v40 = vpop.f32.mrb[8].mxu0 }
 0x7c0   : > { %v2963_v41 = vadd.f32 %v1138_v35, %v1092_v40  ;;  %v1918_v42 = vpop.f32.mrb[9].mxu0 }
 0x7c1   : > { %v1095_v43 = vpop.f32.mrb[10].mxu0 }
 0x7c2   : > { %v1919_v44 = vpop.f32.mrb[11].mxu0 }
 0x7c7   : > { %v1188_v45 = vpop.f32.mrb[12].mxu0 }
 0x7c8   : > { %v1930_v46 = vpop.f32.mrb[13].mxu0  ;;  %v1194_v47 = vsel %vm826_vm1, %v1188_v45, -inf }
 0x7c9   : > { %1195 = vmax.xlane.f32.xlu0 %v1194_v47  ;;  %v1191_v48 = vpop.f32.mrb[14].mxu0 }
 0x7ca   : > { %v1931_v49 = vpop.f32.mrb[15].mxu0 }
 0x856   : > { %v1196_v50 = vpop.xlane.xlu0 %1195 }
 0x857   : > { %v1197_v51 = vsub.f32 %v1188_v45, %v1196_v50 }
 0x859   : > { %v1198_v53 = vmul.f32 1.442695, %v1197_v51 }
 0x85b   : > { %2121 = vpow2.f32 %v1198_v53 }
 0x865   : > { %v2122_v54 = vpop.eup %2121 }
 0x866   : > { %v1200_v55 = vsel %vm826_vm1, %v2122_v54, 0.0 }
 0x867   : > { %1201 = vadd.xlane.f32.xlu1 %v1200_v55 }
 0x878   : > { %1307 = vrot.lane.b32.xlu1 %v2885_v20, %s2472_s3 }
 0x87c   : > { %1305 = vrot.lane.b32.xlu1 %v2891_v26, %s2472_s3  ;;  %v1257_v26 = vld [vmem:[#allocation13 + $0x8] sm:$0xf] }
 0x87d   : > { %v1262_v62 = vsel %vm889_vm2, %v1257_v26, 0 }
 0x87e   : > { %1939 = vmatpush3.bf16.msra.mxu0 %v1262_v62 }
 0x87f   : > { %1950 = vmatprep.subr.bf16.mxu0 %v2468_v0 }
 0x8f4   : > { %v1202_v56 = vpop.xlane.xlu1 %1201 }
 0x8f5   : > { %2123 = vrcp.f32 %v1202_v56 }
 0x8f8   : > { %v1308_v59 = vpop.permute.xlu1 %1307 }
 0x8f9   : > { %v1313_v61 = vsel %vm826_vm1, %v1308_v59, 0 }
 0x8fc   : > { %v1306_v20 = vpop.permute.xlu1 %1305 }
 0x8ff   : > { %v2124_v57 = vpop.eup %2123 }
 0x900   : > { %v1204_v58 = vmul.f32 %v2124_v57, %v2122_v54 }
 0x902   : > { %1763 = vst.msk [vmem:[%s2920_s25 + $0x10] sm:$0xff] %vm826_vm1, %v1204_v58  ;;  %v1207_v60 = vpack.c.bf16 %v1204_v58, %v1204_v58 }
 0x904   : > { %1935 = vmatmul.mubr.msk.bf16.vlgmr.msra.gmra.mrb[24].mxu1 %vm826_vm1, %v1207_v60 }
 0x905   : > { %1945 = vmatpush3.bf16.xpose.msra.mxu1 %v1313_v61  ;;  %1946 = vmatprep.mubr.msk.bf16.mxu1 %vm2469_vm0, %v2468_v0 }
 0x906   : > { %1956 = vmatprep.subr.bf16.mxu1 %v2468_v0 }
 0x90c   : > { %1947 = vmatmul.mubr.msk.bf16.vlgmr.msra.gmra.mrb[28].mxu1 %vm826_vm1, %v1306_v20 }
 0x90d   : > { %1958 = vmatprep.mubr.msk.bf16.mxu1 %vm2469_vm0, %v2468_v0  ;;  %1957 = vmatpush3.bf16.msra.mxu1 %v1423_v17 }
 0x9d7   : > { %v1250_v63 = vpop.f32.mrb[24].mxu1 }
 0x9d8   : > { %v1256_v1 = vpack.c.bf16 %v1250_v63, %v1250_v63  ;;  %v1936_v2 = vpop.f32.mrb[25].mxu1 }
 0x9d9   : > { %v1253_v3 = vpop.f32.mrb[26].mxu1 }
 0x9da   : > { %v1937_v4 = vpop.f32.mrb[27].mxu1  ;;  %1941 = vmatmul.mubr.msk.bf16.vlgmr.msra.gmra.mrb[16].mxu0 %vm826_vm1, %v1256_v1 }
 0x9db   : > { %1952 = vmatprep.mubr.msk.bf16.mxu0 %vm2469_vm0, %v2468_v0 }
 0x9df   : > { %v1349_v5 = vpop.f32.mrb[28].mxu1 }
 0x9e0   : > { %v1948_v6 = vpop.f32.mrb[29].mxu1  ;;  %v1355_v7 = vsel %vm826_vm1, %v1349_v5, -inf }
 0x9e1   : > { %1356 = vmax.xlane.f32.xlu0 %v1355_v7  ;;  %v1352_v8 = vpop.f32.mrb[30].mxu1 }
 0x9e2   : > { %v1949_v9 = vpop.f32.mrb[31].mxu1 }
 0x9f7   : > { %1369 = vrot.lane.b32.xlu0 %v2914_v52, %s2472_s3 }
 0xa6e   : > { %v1357_v10 = vpop.xlane.xlu0 %1356 }
 0xa6f   : > { %v1358_v11 = vsub.f32 %v1349_v5, %v1357_v10 }
 0xa71   : > { %v1359_v12 = vmul.f32 1.442695, %v1358_v11 }
 0xa72   : > { %v1370_v13 = vpop.permute.xlu0 %1369 }
 0xa73   : > { %2125 = vpow2.f32 %v1359_v12  ;;  %v1375_v14 = vsel %vm889_vm2, %v1370_v13, 0 }
 0xa74   : > { %1951 = vmatpush3.bf16.msra.mxu0 %v1375_v14 }
 0xa7d   : > { %v2126_v0 = vpop.eup %2125 }
 0xa7e   : > { %v1361_v15 = vsel %vm826_vm1, %v2126_v0, 0.0 }
 0xa7f   : > { %1362 = vadd.xlane.f32.xlu1 %v1361_v15 }
 0xaad   : > { %v1298_v18 = vpop.f32.mrb[16].mxu0 }
 0xaae   : > { %v1304_v52 = vadd.f32 %v1298_v18, %v2963_v41  ;;  %v1942_v19 = vpop.f32.mrb[17].mxu0 }
 0xaaf   : > { %v1301_v21 = vpop.f32.mrb[18].mxu0 }
 0xab0   : > { %v1943_v22 = vpop.f32.mrb[19].mxu0 }
 0xb0c   : > { %v1363_v23 = vpop.xlane.xlu1 %1362 }
 0xb0d   : > { %2127 = vrcp.f32 %v1363_v23 }
 0xb17   : > { %v2128_v24 = vpop.eup %2127 }
 0xb18   : > { %v1365_v25 = vmul.f32 %v2128_v24, %v2126_v0 }
 0xb1a   : > { %1767 = vst.msk [vmem:[%s2920_s25 + $0x18] sm:$0xff] %vm826_vm1, %v1365_v25  ;;  %v1368_v27 = vpack.c.bf16 %v1365_v25, %v1365_v25 }
 0xb1c   : > { %1953 = vmatmul.mubr.msk.bf16.vlgmr.msra.gmra.mrb[20].mxu0 %vm826_vm1, %v1368_v27 }
 0xbef   : > { %v1411_v28 = vpop.f32.mrb[20].mxu0 }
 0xbf0   : > { %v1417_v29 = vpack.c.bf16 %v1411_v28, %v1411_v28  ;;  %v1954_v30 = vpop.f32.mrb[21].mxu0 }
 0xbf1   : > { %v1414_v31 = vpop.f32.mrb[22].mxu0 }
 0xbf2   : > { %v1955_v32 = vpop.f32.mrb[23].mxu0  ;;  %1959 = vmatmul.mubr.msk.bf16.vlgmr.msra.gmra.mrb[32].mxu1 %vm826_vm1, %v1417_v29 }
 0xbf3   : > { %2344 = shalt.err (!%p2341_p11)
}
 0xbf4   : > { %s2345_s19 = scalar_lea.hbm %s3002_s21, 512  ;;  %s2349_s26 = scalar_lea.hbm %s3161_s27, 1024 }
 0xbf5   : > { %p2346_p5 = scmp.ne.s32.totalorder %s3002_s21, %s2345_s19  ;;  %p2350_p0 = scmp.lt.u32.totalorder %s3002_s21, %s3161_s27 }
 0xbf6   : > { %p2351_p4 = scmp.lt.u32.totalorder %s2349_s26, %s2345_s19  ;;  %p2353_p13 = scmp.lt.u32.totalorder %s2345_s19, %s3002_s21 }
 0xbf7   : > { %p2347_p3 = pnand %p2346_p5, %p3162_p2 }
 0xbf8   : > { %p2352_p10 = por %p2351_p4, %p2350_p0 }
 0xbf9   : > { %p2348_p6 = pneg %p2347_p3 }
 0xbfa   : > { %p2354_p1 = por %p2353_p13, %p2352_p10 }
 0xbfc   : > { %p2355_p12 = pnand %p2354_p1, %p2348_p6 }
 0xbfe   : > { %2358 = shalt.err (!%p2355_p12)
}
 0xbff   : > { %s2474_s28 = smov 128   ;;  %s2475_s25 = smov 8  }
 0xc00   : > { %1985 = dma.vmem_to_hbm [thread:$0]  (%p3162_p2), %s3004_s7, 512, %s3002_s21, %s1481_s5, %s2474_s28, %s2474_s28, %s2475_s25  }
 0xc01   : > { %s1729_s23 = sshll.u32 %s2829_s13, 3  ;;  %s3163_s9 = sld [smem:[#allocation32_spill]] }
 0xc02   : > { %s1773_s17 = sshll.u32 %s2449_s12, 7  ;;  %s499_s30 = scalar_lea.vmem [#allocation14], %s1729_s23 }
 0xc03   : > { %s1495_s22 = sshll.u32 %s499_s30, 4  ;;  %s3164_s24 = sld [smem:[#allocation33_spill]]  ;;  %s3040_s22 = int_to_ptr.vmem [resolvable:$true] %s1495_s22 }
 0xc04   : > { %s1476_s7 = scalar_lea.sflag [#allocation4], %s2829_s13  ;;  %s2359_s12 = scalar_lea.vmem %s3040_s22, 128 }
 0xc05   : > { %p2360_p8 = scmp.ne.s32.totalorder %s3040_s22, %s2359_s12  ;;  %s2476_s21 = smov [#allocation14]  }
 0xc06   : > { %s2363_s5 = sshll.u32 %s2476_s21, 4  ;;  %s2364_s5 = int_to_ptr.vmem [resolvable:$false] %s2363_s5 }
 0xc07   : > { %v1770_v34 = vld [vmem:[%s3163_s9] ss:$0 sm:$0xff]  ;;  %p2361_p9 = pnand %p2360_p8, %p3162_p2  ;;  %s2365_s16 = scalar_lea.vmem %s2364_s5, 256 }
 0xc08   : > { %p2366_p11 = scmp.lt.s32.totalorder %s3040_s22, %s2364_s5  ;;  %p2367_p5 = scmp.lt.s32.totalorder %s2365_s16, %s2359_s12 }
 0xc09   : > { %s3038_s19 = scalar_lea.hbm %s3164_s24, %s1773_s17  ;;  %p2362_p7 = pneg %p2361_p9 }
 0xc0a   : > { %p2368_p3 = por %p2367_p5, %p2366_p11 }
 0xc0c   : > { %p2369_p6 = pnand %p2368_p3, %p2362_p7 }
 0xcc5   : > { %v1459_v33 = vpop.f32.mrb[32].mxu1 }
 0xcc6   : > { %v1465_v35 = vadd.f32 %v1459_v33, %v1304_v52  ;;  %v1960_v36 = vpop.f32.mrb[33].mxu1 }
 0xcc7   : > { %v1462_v37 = vpop.f32.mrb[34].mxu1 }
 0xcc8   : > { %v1473_v38 = vadd.f32 %v1770_v34, %v1465_v35  ;;  %v1961_v39 = vpop.f32.mrb[35].mxu1 }
 0xcca   : > { %1474 = vst [vmem:[%s499_s30] sm:$0xff] %v1473_v38 }
 0xccb   : > { %2372 = shalt.err (!%p2369_p6)
}
 0xccc   : > { %s2373_s13 = scalar_lea.hbm %s3038_s19, 128  ;;  %s2377_s14 = scalar_lea.hbm %s3164_s24, 256 }
 0xccd   : > { %p2374_p0 = scmp.ne.s32.totalorder %s3038_s19, %s2373_s13  ;;  %p2378_p13 = scmp.lt.u32.totalorder %s3038_s19, %s3164_s24 }
 0xcce   : > { %p2379_p1 = scmp.lt.u32.totalorder %s2377_s14, %s2373_s13  ;;  %p2381_p8 = scmp.lt.u32.totalorder %s2373_s13, %s3038_s19 }
 0xccf   : > { %p2375_p4 = pnand %p2374_p0, %p3162_p2 }
 0xcd0   : > { %p2380_p12 = por %p2379_p1, %p2378_p13 }
 0xcd1   : > { %p2376_p10 = pneg %p2375_p4 }
 0xcd2   : > { %p2382_p9 = por %p2381_p8, %p2380_p12 }
 0xcd4   : > { %p2383_p7 = pnand %p2382_p9, %p2376_p10 }
 0xcd6   : > { %2386 = shalt.err (!%p2383_p7)
}
 0xcd7   : > { %1984 = dma.vmem_to_hbm [thread:$0]  (%p3162_p2), %s3040_s22, 128, %s3038_s19, %s1476_s7  }
 0xcd8 PF: > { %s3165_s25 = sld [smem:[#allocation23_spill]]  ;;  %s3166_s23 = sld [smem:[#allocation28_spill]] }
 0xcd9   : > { %s3167_s3 = sld [smem:[#allocation25_spill]] }
 0xcde   : > { %s1524_s18 = sand.u32 1, %s3165_s25   ;;  %p3168_p11 = scmp.ne.s32.totalorder %s3166_s23, 0 }
 0xcdf   : > { %p3169_p5 = scmp.ge.s32.totalorder %s3167_s3, 2  ;;  %s1525_s9 = scalar_lea.sflag [#allocation4], %s1524_s18 }
 0xce1   : > { %p2012_p3 = pnand %p3169_p5, %p3168_p11 }
 0xce3   : > { %2428 = dma.done.wait (!%p2012_p3), %s1525_s9, 128  }
 0xce4   : > { %2430 = vsyncadd (!%p2012_p3), %s1525_s9, 4294967168  ;;  %s1534_s17 = scalar_lea.sflag [#allocation16], %s1524_s18 }
 0xce5   : > { %2432 = dma.done.wait (!%p2012_p3), %s1534_s17, 512  }
 0xce6   : > { %2434 = vsyncadd (!%p2012_p3), %s1534_s17, 4294966784  ;;  %s34_s14 = sadd.s32 1, %s3167_s3   ;;  %s3170_s29 = sld [smem:[#allocation27_spill]] }
 0xce7   : > { %p31_p6 = scmp.ge.s32.totalorder %s34_s14, 4   ;;  %s3171_s12 = sld [smem:[#allocation24_spill]] }
 0xce8   : > { %s3172_s13 = sld [smem:[#allocation26_spill]]  ;;  %s3173_s30 = smov %s2441_s10 }
 0xce9   : > { %s3174_s10 = smov %s2445_s11  ;;  %33 = sbr.rel (!%p31_p6) target bundleno = 19 (0x13), region = 157 }
 0xcec   : > { %s3175_s11 = smov %s3170_s29 }
 0xcf0   :  { %1539 = vsyncpa [#allocation3], 1 }
 0xcf1   :  { %1541 = vsyncpa [#allocation3 + $0x1], 1 }
 0xcf2   :  { %1542 = vsyncpa [#allocation6], 1 }
 0xcf3   :  { %1544 = vsyncpa [#allocation6 + $0x1], 1 }
 0xcf4   :  { %1545 = vsyncpa [#allocation9], 1 }
 0xcf5   :  { %1546 = vsyncpa [#allocation12], 1 }
 0xcf6   :  { %1547 = vsyncpa [#allocation4], 1 }
 0xcf7   :  { %1549 = vsyncpa [#allocation4 + $0x1], 1 }
 0xcf8   :  { %1550 = vsyncpa [#allocation16], 1 }
 0xcf9   :  { %1552 = vsyncpa [#allocation16 + $0x1], 1 }

</bundles_post_ra>
